<compile_context>
chip_gen: v5e
topology: v5e:2x2
jax: 0.10.0
libtpu: 0.0.40
codegen_flags: <defaults>
</compile_context>

<pallas_src>
import functools

import jax
import jax.numpy as jnp
from jax.experimental import pallas as pl
from jax.experimental.pallas import tpu as pltpu


# ----------------------------------------------------------------------------
# Kernel 1: non-recurrent x pre-pass.
# Input x arrives already zero-padded + flattened to (P2, Cin) rows; each 3x3
# tap is a contiguous row slab.  Output: (Q, 4C) f32 gate pre-activations
# (bias folded in), Q = H*(W+2) rows (includes masked-later junk columns).
# ----------------------------------------------------------------------------
def _xgate_kernel(xflat_ref, w_ref, b_ref, xg_ref, *, W, Q, C):
    Wp = W + 2
    acc = jnp.broadcast_to(b_ref[...], (Q, 4 * C)).astype(jnp.float32)
    for dy in range(3):
        for dx in range(3):
            k = dy * 3 + dx
            off = dy * Wp + dx
            acc = acc + jnp.dot(xflat_ref[pl.ds(off, Q), :], w_ref[k],
                                preferred_element_type=jnp.float32)
    xg_ref[...] = acc


# ----------------------------------------------------------------------------
# Kernel 2: recurrent pass over the whole sequence for one layer.
# Grid = (B, T); h/c carried in VMEM scratch (flat padded-row layout, bf16
# matmul copy + separate f32 c state).  9 fused (Q,2C)x(2C,4C) matmuls/step.
# ----------------------------------------------------------------------------
def _recurrent_kernel(xg_ref, ntt_ref, mask_ref, w_ref,
                      h_seq_ref, c_last_ref,
                      hcbuf_ref, c_ref, *, H, W, C):
    Wp = W + 2
    Q = H * Wp
    off_write = Wp + 1                      # padded position (1, 1)
    t_idx = pl.program_id(1)

    # ---- start of a sequence: h = c = 0 (also zeroes all halo rows) --------
    @pl.when(t_idx == 0)
    def _init():
        hcbuf_ref[...] = jnp.zeros_like(hcbuf_ref)
        c_ref[...] = jnp.zeros_like(c_ref)

    # ---- fused h/c convolution: 9 contiguous-slab matmuls ------------------
    # acc starts from the precomputed x contribution (+ bias), column order
    # [ i | o | c_tilde | c_S ] (4C = 128 lanes).
    acc = xg_ref[...]
    for dy in range(3):
        for dx in range(3):
            k = dy * 3 + dx
            off = dy * Wp + dx
            acc = acc + jnp.dot(hcbuf_ref[pl.ds(off, Q), :], w_ref[k],
                                preferred_element_type=jnp.float32)

    # ---- gates (all f32 element-wise math) ----------------------------------
    sig = jax.nn.sigmoid(acc[:, :2 * C])    # one sigmoid over [ i | o ]
    i_m = sig[:, :C]
    o_m = sig[:, C:]
    c_tilde = jnp.tanh(acc[:, 2 * C:3 * C])
    c_S = acc[:, 3 * C:]
    f_m = i_m                               # reference quirk: i_conv applied twice

    c_cur = c_ref[...]                      # f32 recurrent cell state (Q, C)
    c_hat = c_S * ntt_ref[...]              # ntt = -tanh(time), (Q, 1) broadcast
    c_star = (c_cur - c_S) + c_hat
    c_m = f_m * c_star + i_m * c_tilde
    h_m = o_m * jnp.tanh(c_m)

    # ---- zero the wrap-around junk rows so the slab write-back keeps halos 0
    mask = mask_ref[...]                    # (Q, 1) f32: 1 on valid columns
    h_mz = h_m * mask
    c_mz = c_m * mask

    # ---- carry state to the next timestep -----------------------------------
    c_ref[...] = c_mz
    hcbuf_ref[pl.ds(off_write, Q), :] = jnp.concatenate(
        [h_mz, c_mz], axis=-1).astype(hcbuf_ref.dtype)

    # ---- lane-dense outputs: (H, W*C), junk columns stripped ----------------
    h_seq_ref[...] = h_mz.reshape(H, Wp * C)[:, :W * C]

    @pl.when(t_idx == pl.num_programs(1) - 1)
    def _final():
        c_last_ref[...] = c_mz.reshape(H, Wp * C)[:, :W * C]


# ----------------------------------------------------------------------------
# One layer = x pre-pass + recurrent pass.
# ----------------------------------------------------------------------------
def _layer_forward(p, x_seq, ntt_seq, mask, matmul_dtype):
    T, B, H, W, Cin = x_seq.shape
    C = p['hidden_dim']
    Wp = W + 2
    Q = H * Wp                              # computed rows per step
    P = (H + 2) * Wp                        # padded frame rows
    off_max = 2 * Wp + 2                    # largest tap offset
    P2 = -(-(off_max + Q) // 8) * 8         # buffer rows, sublane aligned (>= P)

    w_x = p['w_x'].astype(matmul_dtype)     # (9, Cin, 4C)
    w_hc = p['w_hc'].astype(matmul_dtype)   # (9, 2C, 4C)
    bias = p['b']                           # (1, 4C) f32

    # ---- x pre-pass: pad + flatten x once in the wrapper (non-recurrent) ----
    xpad = jnp.pad(x_seq, ((0, 0), (0, 0), (1, 1), (1, 1), (0, 0)))
    xflat = xpad.reshape(T, B, P, Cin)
    xflat = jnp.pad(xflat, ((0, 0), (0, 0), (0, P2 - P), (0, 0)))
    xflat = xflat.astype(matmul_dtype)      # (T, B, P2, Cin)

    xg = pl.pallas_call(
        functools.partial(_xgate_kernel, W=W, Q=Q, C=C),
        grid=(T, B),
        in_specs=[
            pl.BlockSpec((None, None, P2, Cin), lambda t, b: (t, b, 0, 0)),
            pl.BlockSpec((9, Cin, 4 * C), lambda t, b: (0, 0, 0)),
            pl.BlockSpec((1, 4 * C), lambda t, b: (0, 0)),
        ],
        out_specs=pl.BlockSpec((None, None, Q, 4 * C), lambda t, b: (t, b, 0, 0)),
        out_shape=jax.ShapeDtypeStruct((T, B, Q, 4 * C), jnp.float32),
        compiler_params=pltpu.CompilerParams(
            dimension_semantics=("parallel", "parallel"),
            vmem_limit_bytes=32 * 1024 * 1024),
    )(xflat, w_x, bias)

    # ---- recurrent pass -----------------------------------------------------
    # NOTE: batch-blocking (several b per grid step) is a further tunable for
    # v5e/v6e; kept at 1 here so the batch axis stays megacore-splittable.
    h_seq, c_last = pl.pallas_call(
        functools.partial(_recurrent_kernel, H=H, W=W, C=C),
        grid=(B, T),
        in_specs=[
            pl.BlockSpec((None, None, Q, 4 * C), lambda b, t: (t, b, 0, 0)),
            pl.BlockSpec((None, None, Q, 1), lambda b, t: (t, b, 0, 0)),
            pl.BlockSpec((Q, 1), lambda b, t: (0, 0)),
            pl.BlockSpec((9, 2 * C, 4 * C), lambda b, t: (0, 0, 0)),
        ],
        out_specs=(
            pl.BlockSpec((None, None, H, W * C), lambda b, t: (t, b, 0, 0)),
            pl.BlockSpec((None, H, W * C), lambda b, t: (b, 0, 0)),
        ),
        out_shape=(
            jax.ShapeDtypeStruct((T, B, H, W * C), jnp.float32),   # h sequence
            jax.ShapeDtypeStruct((B, H, W * C), jnp.float32),      # final c
        ),
        scratch_shapes=[
            pltpu.VMEM((P2, 2 * C), matmul_dtype),   # flat zero-padded [h | c]
            pltpu.VMEM((Q, C), jnp.float32),         # f32 c recurrence
        ],
        compiler_params=pltpu.CompilerParams(
            dimension_semantics=("parallel", "arbitrary"),
            vmem_limit_bytes=32 * 1024 * 1024),
    )(xg, ntt_seq, mask, w_hc)

    return h_seq.reshape(T, B, H, W, C), c_last.reshape(B, H, W, C)


# ----------------------------------------------------------------------------
# Multi-layer driver (matches ConvTimeAware_LSTM.forward, batch_first=True,
# return_all_layers=False, hidden_state=None).
# ----------------------------------------------------------------------------
def pallas_forward(params_list, x_btchw, t_btchw, matmul_dtype=jnp.bfloat16):
    B, T, _, H, W = x_btchw.shape
    Wp = W + 2
    Q = H * Wp

    x_seq = jnp.transpose(x_btchw, (1, 0, 3, 4, 2))                # (T,B,H,W,C)

    # -tanh(time) precomputed once, laid out in the kernel's (H, W+2) frame.
    ntt = -jnp.tanh(jnp.transpose(t_btchw, (1, 0, 3, 4, 2)))       # (T,B,H,W,1)
    ntt = jnp.pad(ntt, ((0, 0), (0, 0), (0, 0), (0, 2), (0, 0)))
    ntt = ntt.reshape(T, B, Q, 1)

    # resident valid-row mask (1 on real columns, 0 on wrap-around columns)
    mask = ((jnp.arange(Q) % Wp) < W).astype(jnp.float32).reshape(Q, 1)

    cur = x_seq
    c_last = None
    for p in params_list:
        cur, c_last = _layer_forward(p, cur, ntt, mask, matmul_dtype)
    h_last = cur[-1]                                               # (B,H,W,C)

    out_nchw = jnp.transpose(cur, (1, 0, 4, 2, 3))                 # (B,T,C,H,W)
    h_nchw = jnp.transpose(h_last, (0, 3, 1, 2))
    c_nchw = jnp.transpose(c_last, (0, 3, 1, 2))
    return [out_nchw], [(h_nchw, c_nchw)]


# ----------------------------------------------------------------------------
# Parameter init (mirrors the nn.Conv2d shapes) + fused kernel-layout weights.
# ----------------------------------------------------------------------------
def init_cell_params(key, input_dim, hidden_dim):
    ks = jax.random.split(key, 10)
    comb = input_dim + hidden_dim

    def conv_init(kw, kb, cin, cout):
        w = jax.random.normal(kw, (cout, cin, 3, 3), jnp.float32) * 0.1  # OIHW
        b = jax.random.normal(kb, (cout,), jnp.float32) * 0.1
        return w, b

    w_i, b_i = conv_init(ks[0], ks[1], comb, hidden_dim)
    _w_f, _b_f = conv_init(ks[2], ks[3], comb, hidden_dim)   # f_conv: unused in fwd
    w_o, b_o = conv_init(ks[4], ks[5], comb, hidden_dim)
    w_cs, b_cs = conv_init(ks[6], ks[7], hidden_dim, hidden_dim)
    w_ct, b_ct = conv_init(ks[8], ks[9], comb, hidden_dim)
    return dict(w_i=w_i, b_i=b_i, w_o=w_o, b_o=b_o,
                w_cs=w_cs, b_cs=b_cs, w_ct=w_ct, b_ct=b_ct)


def _to_taps(w_oihw):
    # (O, I, 3, 3) -> (3, 3, I, O) -> (9, I, O); tap k = ky*3 + kx
    return jnp.transpose(w_oihw, (2, 3, 1, 0)).reshape(
        9, w_oihw.shape[1], w_oihw.shape[0])


def build_kernel_params(raw, input_dim, hidden_dim):
    """Fuse the gate convs along Cout (order [i|o|c_tilde|c_S]); split K into
    an x part (pre-pass) and an [h|c] part (recurrent).  Kept f32; cast to the
    matmul dtype at call time."""
    C = hidden_dim
    wi, wo, wct = _to_taps(raw['w_i']), _to_taps(raw['w_o']), _to_taps(raw['w_ct'])
    wcs = _to_taps(raw['w_cs'])                                   # (9, C, C)

    # x part of the [x,h] gate convs, zero for the c_S slot
    gx = jnp.concatenate([wi[:, :input_dim], wo[:, :input_dim],
                          wct[:, :input_dim]], axis=-1)           # (9, Cin, 3C)
    w_x = jnp.concatenate([gx, jnp.zeros((9, input_dim, C), jnp.float32)],
                          axis=-1)                                # (9, Cin, 4C)

    # h part of the gate convs (zero for c_S) stacked over the c part (c_S only)
    gh = jnp.concatenate([wi[:, input_dim:], wo[:, input_dim:],
                          wct[:, input_dim:]], axis=-1)           # (9, C, 3C)
    w_h = jnp.concatenate([gh, jnp.zeros((9, C, C), jnp.float32)], axis=-1)
    w_c = jnp.concatenate([jnp.zeros((9, C, 3 * C), jnp.float32), wcs], axis=-1)
    w_hc = jnp.concatenate([w_h, w_c], axis=1)                    # (9, 2C, 4C)

    b = jnp.concatenate([raw['b_i'], raw['b_o'], raw['b_ct'],
                         raw['b_cs']]).reshape(1, 4 * C)          # f32
    return {'w_x': w_x, 'w_hc': w_hc, 'b': b,
            'hidden_dim': C, 'input_dim': input_dim}


# ----------------------------------------------------------------------------
# Pure-JAX reference (direct transcription of the PyTorch forward, NCHW).
# ----------------------------------------------------------------------------
def _conv_ref(x, w, b, conv_dtype):
    out = jax.lax.conv_general_dilated(
        x.astype(conv_dtype), w.astype(conv_dtype),
        window_strides=(1, 1), padding=((1, 1), (1, 1)),
        dimension_numbers=('NCHW', 'OIHW', 'NCHW'),
        preferred_element_type=jnp.float32)
    return out + b[None, :, None, None]


def ref_cell(raw, x, t, h, c, conv_dtype):
    xh = jnp.concatenate([x, h], axis=1)
    i_m = jax.nn.sigmoid(_conv_ref(xh, raw['w_i'], raw['b_i'], conv_dtype))
    f_m = jax.nn.sigmoid(_conv_ref(xh, raw['w_i'], raw['b_i'], conv_dtype))  # i_conv twice
    c_S = _conv_ref(c, raw['w_cs'], raw['b_cs'], conv_dtype)
    c_hat = c_S * -1.0 * jnp.tanh(t)
    c_star = (c - c_S) + c_hat
    c_tilde = jnp.tanh(_conv_ref(xh, raw['w_ct'], raw['b_ct'], conv_dtype))
    c_m = f_m * c_star + i_m * c_tilde
    o_m = jax.nn.sigmoid(_conv_ref(xh, raw['w_o'], raw['b_o'], conv_dtype))
    h_m = o_m * jnp.tanh(c_m)
    return h_m, c_m


def ref_forward(params_list, x_btchw, t_btchw, conv_dtype=jnp.float32):
    B, T, _, H, W = x_btchw.shape
    cur = x_btchw
    layer_outputs, last_states = [], []
    for p in params_list:
        raw = p['raw']
        Ch = raw['b_i'].shape[0]
        h = jnp.zeros((B, Ch, H, W), jnp.float32)
        c = jnp.zeros_like(h)
        outs = []
        for t_idx in range(T):
            h, c = ref_cell(raw, cur[:, t_idx], t_btchw[:, t_idx], h, c, conv_dtype)
            outs.append(h)
        cur = jnp.stack(outs, axis=1)
        layer_outputs.append(cur)
        last_states.append((h, c))
    return layer_outputs[-1:], last_states[-1:]


if __name__ == "__main__":
    key = jax.random.PRNGKey(0)
    B, T, Cin, H, W = 2, 8, 4, 16, 16
    hidden_dims = [32, 32]        # num_layers = 2, kernel_size = (3, 3)

    kx, kt, kp = jax.random.split(key, 3)
    x = jax.random.normal(kx, (B, T, Cin, H, W), jnp.float32)
    tt = jax.random.uniform(kt, (B, T, 1, H, W), jnp.float32)

    params_list = []
    in_dim = Cin
    pkeys = jax.random.split(kp, len(hidden_dims))
    for i, hd in enumerate(hidden_dims):
        raw = init_cell_params(pkeys[i], in_dim, hd)
        fused = build_kernel_params(raw, in_dim, hd)
        fused['raw'] = raw
        params_list.append(fused)
        in_dim = hd

    # ---- strict correctness check: f32 operands vs f32 reference -----------
    # Only f32 summation-order differences remain, so 2e-3 has wide margin.
    outs32, states32 = pallas_forward(params_list, x, tt, matmul_dtype=jnp.float32)
    jax.block_until_ready(outs32[-1])
    ref_outs, ref_states = ref_forward(params_list, x, tt, conv_dtype=jnp.float32)
    tol = dict(rtol=2e-3, atol=2e-3)
    assert jnp.allclose(outs32[-1], ref_outs[-1], **tol)
    assert jnp.allclose(states32[-1][0], ref_states[-1][0], **tol)
    assert jnp.allclose(states32[-1][1], ref_states[-1][1], **tol)

    # ---- performance path: bf16 MXU operands, f32 accumulation / gates -----
    # bf16 recurrent-operand rounding diverges chaotically over T steps and
    # layers, so this run is gated on execution + finiteness, not on a tight
    # elementwise tolerance (the f32 run above is the semantic check).
    outs_bf, states_bf = pallas_forward(params_list, x, tt, matmul_dtype=jnp.bfloat16)
    jax.block_until_ready(outs_bf[-1])
    jax.block_until_ready(states_bf[-1][0])
    jax.block_until_ready(states_bf[-1][1])
    assert bool(jnp.all(jnp.isfinite(outs_bf[-1])))
    assert bool(jnp.all(jnp.isfinite(states_bf[-1][1])))

    print("KERNEL_OK")
</pallas_src>

<mosaic_0001>
module attributes {stable_mosaic.version = 11 : i64} {
  func.func @_xgate_kernel(%arg0: i32, %arg1: i32, %arg2: memref<1x1x328x4xf32, #tpu.memory_space<vmem>>, %arg3: memref<9x4x128xf32, #tpu.memory_space<vmem>>, %arg4: memref<1x128xf32, #tpu.memory_space<vmem>>, %arg5: memref<1x1x288x128xf32, #tpu.memory_space<vmem>>) attributes {dimension_semantics = [#tpu.dimension_semantics<parallel>, #tpu.dimension_semantics<parallel>], iteration_bounds = array<i64: 8, 2>, scalar_prefetch = 0 : i64, scratch_operands = 0 : i64, tpu.core_type = #tpu.core_type<tc>, window_params = [{transform_indices = @transform_0, window_bounds = array<i64: 1, 1, 328, 4>}, {pipeline_mode = #tpu.pipeline_mode<synchronous>, transform_indices = @transform_1, window_bounds = array<i64: 9, 4, 128>}, {pipeline_mode = #tpu.pipeline_mode<synchronous>, transform_indices = @transform_2, window_bounds = array<i64: 1, 128>}, {transform_indices = @transform_3, window_bounds = array<i64: 1, 1, 288, 128>}]} {
    %c0 = arith.constant 0 : index
    %c0_0 = arith.constant 0 : index
    %0 = vector.load %arg4[%c0, %c0_0] : memref<1x128xf32, #tpu.memory_space<vmem>>, vector<1x128xf32>
    %1 = vector.shape_cast %0 : vector<1x128xf32> to vector<1x128xf32>
    %2 = vector.broadcast %1 : vector<1x128xf32> to vector<288x128xf32>
    %c0_1 = arith.constant 0 : index
    %c0_2 = arith.constant 0 : index
    %c0_3 = arith.constant 0 : index
    %c0_4 = arith.constant 0 : index
    %3 = vector.load %arg2[%c0_1, %c0_2, %c0_3, %c0_4] : memref<1x1x328x4xf32, #tpu.memory_space<vmem>>, vector<1x1x288x4xf32>
    %4 = vector.shape_cast %3 : vector<1x1x288x4xf32> to vector<288x4xf32>
    %c0_5 = arith.constant 0 : index
    %c0_6 = arith.constant 0 : index
    %c0_7 = arith.constant 0 : index
    %5 = vector.load %arg3[%c0_5, %c0_6, %c0_7] : memref<9x4x128xf32, #tpu.memory_space<vmem>>, vector<1x4x128xf32>
    %6 = vector.shape_cast %5 : vector<1x4x128xf32> to vector<4x128xf32>
    %cst = arith.constant dense<0.000000e+00> : vector<288x128xf32>
    %7 = tpu.matmul %4, %6, %cst {dimension_numbers = #tpu.dot_dimension_numbers<[1], [0], [0], [1], [0, 0, 1, 1], [], []>} : vector<288x4xf32>, vector<4x128xf32>, vector<288x128xf32> -> vector<288x128xf32>
    %8 = arith.addf %2, %7 : vector<288x128xf32>
    %c0_8 = arith.constant 0 : index
    %c0_9 = arith.constant 0 : index
    %c1 = arith.constant 1 : index
    %c0_10 = arith.constant 0 : index
    %9 = vector.load %arg2[%c0_8, %c0_9, %c1, %c0_10] : memref<1x1x328x4xf32, #tpu.memory_space<vmem>>, vector<1x1x288x4xf32>
    %10 = vector.shape_cast %9 : vector<1x1x288x4xf32> to vector<288x4xf32>
    %c1_11 = arith.constant 1 : index
    %c0_12 = arith.constant 0 : index
    %c0_13 = arith.constant 0 : index
    %11 = vector.load %arg3[%c1_11, %c0_12, %c0_13] : memref<9x4x128xf32, #tpu.memory_space<vmem>>, vector<1x4x128xf32>
    %12 = vector.shape_cast %11 : vector<1x4x128xf32> to vector<4x128xf32>
    %cst_14 = arith.constant dense<0.000000e+00> : vector<288x128xf32>
    %13 = tpu.matmul %10, %12, %cst_14 {dimension_numbers = #tpu.dot_dimension_numbers<[1], [0], [0], [1], [0, 0, 1, 1], [], []>} : vector<288x4xf32>, vector<4x128xf32>, vector<288x128xf32> -> vector<288x128xf32>
    %14 = arith.addf %8, %13 : vector<288x128xf32>
    %c0_15 = arith.constant 0 : index
    %c0_16 = arith.constant 0 : index
    %c2 = arith.constant 2 : index
    %c0_17 = arith.constant 0 : index
    %15 = vector.load %arg2[%c0_15, %c0_16, %c2, %c0_17] : memref<1x1x328x4xf32, #tpu.memory_space<vmem>>, vector<1x1x288x4xf32>
    %16 = vector.shape_cast %15 : vector<1x1x288x4xf32> to vector<288x4xf32>
    %c2_18 = arith.constant 2 : index
    %c0_19 = arith.constant 0 : index
    %c0_20 = arith.constant 0 : index
    %17 = vector.load %arg3[%c2_18, %c0_19, %c0_20] : memref<9x4x128xf32, #tpu.memory_space<vmem>>, vector<1x4x128xf32>
    %18 = vector.shape_cast %17 : vector<1x4x128xf32> to vector<4x128xf32>
    %cst_21 = arith.constant dense<0.000000e+00> : vector<288x128xf32>
    %19 = tpu.matmul %16, %18, %cst_21 {dimension_numbers = #tpu.dot_dimension_numbers<[1], [0], [0], [1], [0, 0, 1, 1], [], []>} : vector<288x4xf32>, vector<4x128xf32>, vector<288x128xf32> -> vector<288x128xf32>
    %20 = arith.addf %14, %19 : vector<288x128xf32>
    %c0_22 = arith.constant 0 : index
    %c0_23 = arith.constant 0 : index
    %c18 = arith.constant 18 : index
    %c0_24 = arith.constant 0 : index
    %21 = vector.load %arg2[%c0_22, %c0_23, %c18, %c0_24] : memref<1x1x328x4xf32, #tpu.memory_space<vmem>>, vector<1x1x288x4xf32>
    %22 = vector.shape_cast %21 : vector<1x1x288x4xf32> to vector<288x4xf32>
    %c3 = arith.constant 3 : index
    %c0_25 = arith.constant 0 : index
    %c0_26 = arith.constant 0 : index
    %23 = vector.load %arg3[%c3, %c0_25, %c0_26] : memref<9x4x128xf32, #tpu.memory_space<vmem>>, vector<1x4x128xf32>
    %24 = vector.shape_cast %23 : vector<1x4x128xf32> to vector<4x128xf32>
    %cst_27 = arith.constant dense<0.000000e+00> : vector<288x128xf32>
    %25 = tpu.matmul %22, %24, %cst_27 {dimension_numbers = #tpu.dot_dimension_numbers<[1], [0], [0], [1], [0, 0, 1, 1], [], []>} : vector<288x4xf32>, vector<4x128xf32>, vector<288x128xf32> -> vector<288x128xf32>
    %26 = arith.addf %20, %25 : vector<288x128xf32>
    %c0_28 = arith.constant 0 : index
    %c0_29 = arith.constant 0 : index
    %c19 = arith.constant 19 : index
    %c0_30 = arith.constant 0 : index
    %27 = vector.load %arg2[%c0_28, %c0_29, %c19, %c0_30] : memref<1x1x328x4xf32, #tpu.memory_space<vmem>>, vector<1x1x288x4xf32>
    %28 = vector.shape_cast %27 : vector<1x1x288x4xf32> to vector<288x4xf32>
    %c4 = arith.constant 4 : index
    %c0_31 = arith.constant 0 : index
    %c0_32 = arith.constant 0 : index
    %29 = vector.load %arg3[%c4, %c0_31, %c0_32] : memref<9x4x128xf32, #tpu.memory_space<vmem>>, vector<1x4x128xf32>
    %30 = vector.shape_cast %29 : vector<1x4x128xf32> to vector<4x128xf32>
    %cst_33 = arith.constant dense<0.000000e+00> : vector<288x128xf32>
    %31 = tpu.matmul %28, %30, %cst_33 {dimension_numbers = #tpu.dot_dimension_numbers<[1], [0], [0], [1], [0, 0, 1, 1], [], []>} : vector<288x4xf32>, vector<4x128xf32>, vector<288x128xf32> -> vector<288x128xf32>
    %32 = arith.addf %26, %31 : vector<288x128xf32>
    %c0_34 = arith.constant 0 : index
    %c0_35 = arith.constant 0 : index
    %c20 = arith.constant 20 : index
    %c0_36 = arith.constant 0 : index
    %33 = vector.load %arg2[%c0_34, %c0_35, %c20, %c0_36] : memref<1x1x328x4xf32, #tpu.memory_space<vmem>>, vector<1x1x288x4xf32>
    %34 = vector.shape_cast %33 : vector<1x1x288x4xf32> to vector<288x4xf32>
    %c5 = arith.constant 5 : index
    %c0_37 = arith.constant 0 : index
    %c0_38 = arith.constant 0 : index
    %35 = vector.load %arg3[%c5, %c0_37, %c0_38] : memref<9x4x128xf32, #tpu.memory_space<vmem>>, vector<1x4x128xf32>
    %36 = vector.shape_cast %35 : vector<1x4x128xf32> to vector<4x128xf32>
    %cst_39 = arith.constant dense<0.000000e+00> : vector<288x128xf32>
    %37 = tpu.matmul %34, %36, %cst_39 {dimension_numbers = #tpu.dot_dimension_numbers<[1], [0], [0], [1], [0, 0, 1, 1], [], []>} : vector<288x4xf32>, vector<4x128xf32>, vector<288x128xf32> -> vector<288x128xf32>
    %38 = arith.addf %32, %37 : vector<288x128xf32>
    %c0_40 = arith.constant 0 : index
    %c0_41 = arith.constant 0 : index
    %c36 = arith.constant 36 : index
    %c0_42 = arith.constant 0 : index
    %39 = vector.load %arg2[%c0_40, %c0_41, %c36, %c0_42] : memref<1x1x328x4xf32, #tpu.memory_space<vmem>>, vector<1x1x288x4xf32>
    %40 = vector.shape_cast %39 : vector<1x1x288x4xf32> to vector<288x4xf32>
    %c6 = arith.constant 6 : index
    %c0_43 = arith.constant 0 : index
    %c0_44 = arith.constant 0 : index
    %41 = vector.load %arg3[%c6, %c0_43, %c0_44] : memref<9x4x128xf32, #tpu.memory_space<vmem>>, vector<1x4x128xf32>
    %42 = vector.shape_cast %41 : vector<1x4x128xf32> to vector<4x128xf32>
    %cst_45 = arith.constant dense<0.000000e+00> : vector<288x128xf32>
    %43 = tpu.matmul %40, %42, %cst_45 {dimension_numbers = #tpu.dot_dimension_numbers<[1], [0], [0], [1], [0, 0, 1, 1], [], []>} : vector<288x4xf32>, vector<4x128xf32>, vector<288x128xf32> -> vector<288x128xf32>
    %44 = arith.addf %38, %43 : vector<288x128xf32>
    %c0_46 = arith.constant 0 : index
    %c0_47 = arith.constant 0 : index
    %c37 = arith.constant 37 : index
    %c0_48 = arith.constant 0 : index
    %45 = vector.load %arg2[%c0_46, %c0_47, %c37, %c0_48] : memref<1x1x328x4xf32, #tpu.memory_space<vmem>>, vector<1x1x288x4xf32>
    %46 = vector.shape_cast %45 : vector<1x1x288x4xf32> to vector<288x4xf32>
    %c7 = arith.constant 7 : index
    %c0_49 = arith.constant 0 : index
    %c0_50 = arith.constant 0 : index
    %47 = vector.load %arg3[%c7, %c0_49, %c0_50] : memref<9x4x128xf32, #tpu.memory_space<vmem>>, vector<1x4x128xf32>
    %48 = vector.shape_cast %47 : vector<1x4x128xf32> to vector<4x128xf32>
    %cst_51 = arith.constant dense<0.000000e+00> : vector<288x128xf32>
    %49 = tpu.matmul %46, %48, %cst_51 {dimension_numbers = #tpu.dot_dimension_numbers<[1], [0], [0], [1], [0, 0, 1, 1], [], []>} : vector<288x4xf32>, vector<4x128xf32>, vector<288x128xf32> -> vector<288x128xf32>
    %50 = arith.addf %44, %49 : vector<288x128xf32>
    %c0_52 = arith.constant 0 : index
    %c0_53 = arith.constant 0 : index
    %c38 = arith.constant 38 : index
    %c0_54 = arith.constant 0 : index
    %51 = vector.load %arg2[%c0_52, %c0_53, %c38, %c0_54] : memref<1x1x328x4xf32, #tpu.memory_space<vmem>>, vector<1x1x288x4xf32>
    %52 = vector.shape_cast %51 : vector<1x1x288x4xf32> to vector<288x4xf32>
    %c8 = arith.constant 8 : index
    %c0_55 = arith.constant 0 : index
    %c0_56 = arith.constant 0 : index
    %53 = vector.load %arg3[%c8, %c0_55, %c0_56] : memref<9x4x128xf32, #tpu.memory_space<vmem>>, vector<1x4x128xf32>
    %54 = vector.shape_cast %53 : vector<1x4x128xf32> to vector<4x128xf32>
    %cst_57 = arith.constant dense<0.000000e+00> : vector<288x128xf32>
    %55 = tpu.matmul %52, %54, %cst_57 {dimension_numbers = #tpu.dot_dimension_numbers<[1], [0], [0], [1], [0, 0, 1, 1], [], []>} : vector<288x4xf32>, vector<4x128xf32>, vector<288x128xf32> -> vector<288x128xf32>
    %56 = arith.addf %50, %55 : vector<288x128xf32>
    %c0_58 = arith.constant 0 : index
    %c0_59 = arith.constant 0 : index
    %c0_60 = arith.constant 0 : index
    %c0_61 = arith.constant 0 : index
    %57 = vector.load %arg5[%c0_58, %c0_59, %c0_60, %c0_61] : memref<1x1x288x128xf32, #tpu.memory_space<vmem>>, vector<1x1x288x128xf32>
    %58 = vector.shape_cast %57 : vector<1x1x288x128xf32> to vector<288x128xf32>
    %59 = vector.shape_cast %56 : vector<288x128xf32> to vector<1x1x288x128xf32>
    tpu.vector_store %arg5[%c0_58, %c0_59, %c0_60, %c0_61], %59 {strides = array<i32>} : memref<1x1x288x128xf32, #tpu.memory_space<vmem>>, vector<1x1x288x128xf32>,
    return
  }
  func.func @transform_0(%arg0: i32, %arg1: i32) -> (i32, i32, i32, i32) {
    %c0_i32 = arith.constant 0 : i32
    %c0_i32_0 = arith.constant 0 : i32
    %c0_i32_1 = arith.constant 0 : i32
    return %arg0, %arg1, %c0_i32, %c0_i32_0 : i32, i32, i32, i32
  }
  func.func @transform_1(%arg0: i32, %arg1: i32) -> (i32, i32, i32) {
    %c0_i32 = arith.constant 0 : i32
    %c0_i32_0 = arith.constant 0 : i32
    %c0_i32_1 = arith.constant 0 : i32
    %c0_i32_2 = arith.constant 0 : i32
    return %c0_i32, %c0_i32_0, %c0_i32_1 : i32, i32, i32
  }
  func.func @transform_2(%arg0: i32, %arg1: i32) -> (i32, i32) {
    %c0_i32 = arith.constant 0 : i32
    %c0_i32_0 = arith.constant 0 : i32
    %c0_i32_1 = arith.constant 0 : i32
    return %c0_i32, %c0_i32_0 : i32, i32
  }
  func.func @transform_3(%arg0: i32, %arg1: i32) -> (i32, i32, i32, i32) {
    %c0_i32 = arith.constant 0 : i32
    %c0_i32_0 = arith.constant 0 : i32
    %c0_i32_1 = arith.constant 0 : i32
    return %arg0, %arg1, %c0_i32, %c0_i32_0 : i32, i32, i32, i32
  }
}

</mosaic_0001>

<bundles_post_ra>
// kernel: tpu_custom_call.1
= control target key start
LH: loop header
LB: loop body
LE: loop exit
PB: predicated region body
PF: predicated region fallthrough
CT: control target
= control target key end

     0   :  { %8 = vsyncpa [#allocation3], 0  ;;  %s4724_s0 = inlined_call_operand.vmem [shape: f32[8,2,328,4], index: 0, kind: input, shape index: {}]   ;;  %s4725_s1 = inlined_call_operand.vmem [shape: f32[9,4,128], index: 1, kind: input, shape index: {}]   ;;  %s4726_s2 = inlined_call_operand.vmem [shape: f32[1,128], index: 2, kind: input, shape index: {}]   ;;  %s4727_s3 = inlined_call_operand.hbm [shape: f32[8,2,288,128], index: 3, kind: output, shape index: {}]  }
   0x1   :  { %10 = vsyncpa [#allocation3 + $0x1], 0  ;;  %s3682_s12 = smov 0   ;;  %s3684_s13 = smov 0  }
   0x2   :  { %s3686_s14 = smov 0   ;;  %s3688_s15 = smov 0  }
   0x3   :  { %s3690_s16 = smov 0   ;;  %s3692_s17 = smov 0  }
   0x4   :  { %s3694_s18 = smov 0   ;;  %s3696_s19 = smov 0  }
   0x5 LB: > { %s3131_s20 = sadd.s32 4294967295, %s3658_s19   ;;  %s3132_s21 = sadd.s32 4294967294, %s3658_s19   ;;  %s3658_s19 = sphi %s3696_s19, %s16_s19   ;;  %s3654_s18 = sphi %s3694_s18, %s4736_s18   ;;  %s3650_s17 = sphi %s3692_s17, %s4735_s17   ;;  %s3646_s16 = sphi %s3690_s16, %s4734_s16   ;;  %s3642_s15 = sphi %s3688_s15, %s4733_s15   ;;  %s3638_s14 = sphi %s3686_s14, %s4732_s14   ;;  %s3634_s13 = sphi %s3684_s13, %s4731_s13   ;;  %s3630_s12 = sphi %s3682_s12, %s4730_s12  }
   0x6   : > { %s25_s22 = sadd.s32 1, %s3650_s17  ;;  %s28_s23 = sadd.s32 1, %s3654_s18 }
   0x7   : > { %p26_p0 = scmp.ge.s32.totalorder %s25_s22, 2  ;;  %p117_p1 = scmp.ne.s32.totalorder %s3638_s14, %s3634_s13 }
   0x8   : > { %p118_p2 = scmp.eq.s32.totalorder %s3131_s20, 15  ;;  %p123_p5 = scmp.ne.s32.totalorder %s3634_s13, %s3630_s12 }
   0x9   : > { %s4738_s22 = smov (%p26_p0, %s25_s22), 0  ;;  %s4740_s23 = smov (!%p26_p0, %s28_s23), %s3654_s18 }
   0xa   : > { %s103_s24 = ssub.s32 %s3650_s17, %s4738_s22  ;;  %p3733_p3 = por %p118_p2, %p117_p1 }
   0xb   : > { %p30_p4 = scmp.ge.s32.totalorder %s4740_s23, 8  ;;  %p124_p6 = scmp.eq.s32.totalorder %s3132_s21, 15 }
   0xc   : > { %p3135_p7 = scmp.ge.s32.totalorder %s3658_s19, 1  ;;  %p160_p9 = scmp.lt.s32.totalorder %s3658_s19, 17 }
   0xd   : > { %s4742_s23 = smov (%p30_p4, %s4740_s23), 0  ;;  %p3742_p8 = por %p124_p6, %p123_p5 }
   0xe   : > { %s102_s27 = ssub.s32 %s3654_s18, %s4742_s23  ;;  %s107_s28 = sadd.s32 1, %s3638_s14 }
   0xf   : > { %s104_s29 = sor.u32 %s103_s24, %s102_s27  ;;  %p161_p10 = pnand %p3135_p7, %p160_p9 }
  0x10   : > { %p105_p11 = scmp.eq.s32.totalorder %s104_s29, 0  ;;  %p188_p12 = scmp.lt.s32.totalorder (!%p161_p10), %s3646_s16, 7 }
  0x11   : > { %164 = sbr.rel (%p161_p10) target bundleno = 814 (0x32e), region = 32  ;;  %p190_p13 = scmp.lt.s32.totalorder (!%p161_p10), %s3642_s15, 1 }
  0x12   : > { %s3751_s30 = scalar_select %p105_p11, %s3638_s14, %s107_s28  }
  0x13   : > { %s185_s7 = sand.u32 (!%p161_p10), 1, %s3634_s13   ;;  %s3488_s11 = smul.u32 (!%p161_p10), 72, %s3646_s16 }
  0x14   : > { %s3484_s9 = smul.u32 (!%p161_p10), 288, %s185_s7 }
  0x16   : > { %v237_v0 = vld [vmem:[%s4725_s1] sm:$0xf]  ;;  %vm347_vm0 = vcmask 1043456   ;;  %v3212_v1 = vld [vmem:[%s4725_s1 + $0x8] sm:$0xf]  ;;  %s189_s20 = scalar_select %p188_p12, %s3646_s16, 7 }
  0x17   : > { %3481 = vmatpush.msk.msra.mxu1 %vm347_vm0, %v237_v0  ;;  %3482 = vmatpush.msk.msra.mxu2 %vm347_vm0, %v237_v0  ;;  %v3250_v2 = vld [vmem:[%s4725_s1 + $0xc] sm:$0xf]  ;;  %v3174_v3 = vld [vmem:[%s4725_s1 + $0x4] sm:$0xf]  ;;  %v3288_v4 = vld [vmem:[%s4725_s1 + $0x10] sm:$0xf] }
  0x18   : > { %3483 = vmatpush.msk.msra.mxu3 %vm347_vm0, %v237_v0  ;;  %s191_s27 = scalar_select %p190_p13, %s3642_s15, 1  ;;  %3137 = vmatpush.msk.msra.mxu0 %vm347_vm0, %v237_v0  ;;  %vm238_vm1 = vcmask 31744   ;;  %v3364_v29 = vld [vmem:[%s4725_s1 + $0x18] sm:$0xf]  ;;  %v3402_v30 = vld [vmem:[%s4725_s1 + $0x1c] sm:$0xf] }
  0x19   : > { %3213 = vmatpush.msk.msrb.mxu2 %vm347_vm0, %v3212_v1  ;;  %3175 = vmatpush.msk.msrb.mxu1 %vm347_vm0, %v3174_v3  ;;  %s3486_s28 = smul.u32 82, %s189_s20  ;;  %v3326_v31 = vld [vmem:[%s4725_s1 + $0x14] sm:$0xf]  ;;  %v3440_v36 = vld [vmem:[%s4725_s1 + $0x20] sm:$0xf]  ;;  %s4480_s10 = scalar_lea.vmem [#allocation2], %s3484_s9 }
  0x1a   : > { %3251 = vmatpush.msk.msrb.mxu3 %vm347_vm0, %v3250_v2  ;;  %s3485_s29 = smul.u32 41, %s191_s27  ;;  %3289 = vmatpush.msk.msrb.mxu0 %vm347_vm0, %v3288_v4  ;;  %s3043_s27 = sshll.u32 %s4480_s10, 4  ;;  %s3044_s27 = int_to_ptr.vmem [resolvable:$true] %s3043_s27 }
  0x1c   : > { %s194_s4 = sadd.s32 %s3486_s28, %s3485_s29  ;;  %s3029_s29 = scalar_lea.sflag [#allocation3], %s185_s7 }
  0x1d   : > { %s3136_s5 = sshll.u32 %s194_s4, 3 }
  0x1e   : > { %s3783_s8 = scalar_lea.vmem %s4724_s0, %s3136_s5 }
  0x1f   : > { %v210_v5 = vld [vmem:[%s3783_s8 + $0x48] sm:$0xff]  ;;  %v219_v6 = vld [vmem:[%s3783_s8 + $0x90] sm:$0xff]  ;;  %v228_v7 = vld [vmem:[%s3783_s8 + $0xd8] sm:$0xff] }
  0x20   : > { %3147 = vmatmul.msk.f32.vlgmr.msra.gmra.mxu1 %vm238_vm1, %v210_v5  ;;  %3156 = vmatmul.msk.f32.vlgmr.msra.gmra.mxu2 %vm238_vm1, %v219_v6  ;;  %v201_v8 = vld [vmem:[%s3783_s8] sm:$0xff]  ;;  %v211_v9 = vld [vmem:[%s3783_s8 + $0x50] sm:$0xff]  ;;  %v220_v10 = vld [vmem:[%s3783_s8 + $0x98] sm:$0xff] }
  0x21   : > { %3165 = vmatmul.msk.f32.vlgmr.msra.gmra.mxu3 %vm238_vm1, %v228_v7  ;;  %3138 = vmatmul.msk.f32.vlgmr.msra.gmra.mxu0 %vm238_vm1, %v201_v8  ;;  %v229_v11 = vld [vmem:[%s3783_s8 + $0xe0] sm:$0xff]  ;;  %v202_v12 = vld [vmem:[%s3783_s8 + $0x8] sm:$0xff]  ;;  %v212_v13 = vld [vmem:[%s3783_s8 + $0x58] sm:$0xff] }
  0x22   : > { %v221_v14 = vld [vmem:[%s3783_s8 + $0xa0] sm:$0xff]  ;;  %v230_v15 = vld [vmem:[%s3783_s8 + $0xe8] sm:$0xff]  ;;  %v203_v16 = vld [vmem:[%s3783_s8 + $0x10] sm:$0xff]  ;;  %3365 = vmatpush.msk.msra.mxu2 %vm347_vm0, %v3364_v29  ;;  %3403 = vmatpush.msk.msra.mxu3 %vm347_vm0, %v3402_v30 }
  0x23   : > { %v213_v17 = vld [vmem:[%s3783_s8 + $0x60] sm:$0xff]  ;;  %v222_v18 = vld [vmem:[%s3783_s8 + $0xa8] sm:$0xff]  ;;  %v231_v19 = vld [vmem:[%s3783_s8 + $0xf0] sm:$0xff]  ;;  %3327 = vmatpush.msk.msra.mxu1 %vm347_vm0, %v3326_v31  ;;  %3441 = vmatpush.msk.msra.mxu0 %vm347_vm0, %v3440_v36 }
  0x24   : > { %v204_v20 = vld [vmem:[%s3783_s8 + $0x18] sm:$0xff]  ;;  %v214_v21 = vld [vmem:[%s3783_s8 + $0x68] sm:$0xff]  ;;  %v223_v22 = vld [vmem:[%s3783_s8 + $0xb0] sm:$0xff] }
  0x25   : > { %v232_v23 = vld [vmem:[%s3783_s8 + $0xf8] sm:$0xff]  ;;  %v205_v24 = vld [vmem:[%s3783_s8 + $0x20] sm:$0xff]  ;;  %v215_v25 = vld [vmem:[%s3783_s8 + $0x70] sm:$0xff] }
  0x26   : > { %v224_v26 = vld [vmem:[%s3783_s8 + $0xb8] sm:$0xff]  ;;  %v233_v27 = vld [vmem:[%s3783_s8 + $0x100] sm:$0xff]  ;;  %v206_v28 = vld [vmem:[%s3783_s8 + $0x28] sm:$0xff] }
  0x27   : > { %v216_v32 = vld [vmem:[%s3783_s8 + $0x78] sm:$0xff]  ;;  %v225_v33 = vld [vmem:[%s3783_s8 + $0xc0] sm:$0xff]  ;;  %v234_v34 = vld [vmem:[%s3783_s8 + $0x108] sm:$0xff] }
  0x28   : > { %3148 = vmatmul.msk.f32.gmra.mxu1 %vm238_vm1, %v211_v9  ;;  %3157 = vmatmul.msk.f32.gmra.mxu2 %vm238_vm1, %v220_v10  ;;  %v207_v35 = vld [vmem:[%s3783_s8 + $0x30] sm:$0xff]  ;;  %v217_v37 = vld [vmem:[%s3783_s8 + $0x80] sm:$0xff]  ;;  %v226_v38 = vld [vmem:[%s3783_s8 + $0xc8] sm:$0xff] }
  0x29   : > { %3166 = vmatmul.msk.f32.gmra.mxu3 %vm238_vm1, %v229_v11  ;;  %3139 = vmatmul.msk.f32.gmra.mxu0 %vm238_vm1, %v202_v12  ;;  %v235_v39 = vld [vmem:[%s3783_s8 + $0x110] sm:$0xff]  ;;  %v208_v40 = vld [vmem:[%s3783_s8 + $0x38] sm:$0xff]  ;;  %v218_v41 = vld [vmem:[%s3783_s8 + $0x88] sm:$0xff] }
  0x2a   : > { %v227_v42 = vld [vmem:[%s3783_s8 + $0xd0] sm:$0xff]  ;;  %v236_v43 = vld [vmem:[%s3783_s8 + $0x118] sm:$0xff]  ;;  %v209_v44 = vld [vmem:[%s3783_s8 + $0x40] sm:$0xff] }
  0x2b   : > { %v512_v45 = vld [vmem:[%s3783_s8 + $0x1] sm:$0xff]  ;;  %v1132_v47 = vld [vmem:[%s3783_s8 + $0x12] sm:$0xff]  ;;  %v513_v49 = vld [vmem:[%s3783_s8 + $0x9] sm:$0xff] }
  0x2c   : > { %v822_v46 = vld [vmem:[%s3783_s8 + $0x2] sm:$0xff]  ;;  %v1442_v48 = vld [vmem:[%s3783_s8 + $0x13] sm:$0xff]  ;;  %v823_v50 = vld [vmem:[%s3783_s8 + $0xa] sm:$0xff] }
  0x2d   : > { %v1133_v51 = vld [vmem:[%s3783_s8 + $0x1a] sm:$0xff]  ;;  %v514_v53 = vld [vmem:[%s3783_s8 + $0x11] sm:$0xff]  ;;  %v1134_v54 = vld [vmem:[%s3783_s8 + $0x22] sm:$0xff] }
  0x2e   : > { %v1443_v52 = vld [vmem:[%s3783_s8 + $0x1b] sm:$0xff]  ;;  %v1444_v55 = vld [vmem:[%s3783_s8 + $0x23] sm:$0xff]  ;;  %v1445_v58 = vld [vmem:[%s3783_s8 + $0x2b] sm:$0xff] }
  0x2f   : > { %v515_v56 = vld [vmem:[%s3783_s8 + $0x19] sm:$0xff]  ;;  %v1135_v57 = vld [vmem:[%s3783_s8 + $0x2a] sm:$0xff]  ;;  %v516_v59 = vld [vmem:[%s3783_s8 + $0x21] sm:$0xff] }
  0x30   : > { %3149 = vmatmul.msk.f32.gmra.mxu1 %vm238_vm1, %v212_v13  ;;  %3158 = vmatmul.msk.f32.gmra.mxu2 %vm238_vm1, %v221_v14  ;;  %v1136_v60 = vld [vmem:[%s3783_s8 + $0x32] sm:$0xff]  ;;  %v517_v62 = vld [vmem:[%s3783_s8 + $0x29] sm:$0xff]  ;;  %v1137_v63 = vld [vmem:[%s3783_s8 + $0x3a] sm:$0xff] }
  0x31   : > { %3167 = vmatmul.msk.f32.gmra.mxu3 %vm238_vm1, %v230_v15  ;;  %3140 = vmatmul.msk.f32.gmra.mxu0 %vm238_vm1, %v203_v16  ;;  %v1446_v61 = vld [vmem:[%s3783_s8 + $0x33] sm:$0xff]  ;;  %v1447_v0 = vld [vmem:[%s3783_s8 + $0x3b] sm:$0xff]  ;;  %v1448_v3 = vld [vmem:[%s3783_s8 + $0x43] sm:$0xff] }
  0x32   : > { %v518_v1 = vld [vmem:[%s3783_s8 + $0x31] sm:$0xff]  ;;  %v1138_v2 = vld [vmem:[%s3783_s8 + $0x42] sm:$0xff]  ;;  %v519_v5 = vld [vmem:[%s3783_s8 + $0x39] sm:$0xff] }
  0x33   : > { %v1139_v6 = vld [vmem:[%s3783_s8 + $0x4a] sm:$0xff]  ;;  %v520_v12 = vld [vmem:[%s3783_s8 + $0x41] sm:$0xff]  ;;  %v1140_v13 = vld [vmem:[%s3783_s8 + $0x52] sm:$0xff] }
  0x34   : > { %v1449_v8 = vld [vmem:[%s3783_s8 + $0x4b] sm:$0xff]  ;;  %v1450_v15 = vld [vmem:[%s3783_s8 + $0x53] sm:$0xff]  ;;  %v1452_v29 = vld [vmem:[%s3783_s8 + $0x63] sm:$0xff] }
  0x35   : > { %v1453_v36 = vld [vmem:[%s3783_s8 + $0x6b] sm:$0xff] }
  0x38   : > { %3150 = vmatmul.msk.f32.gmra.mxu1 %vm238_vm1, %v213_v17  ;;  %3159 = vmatmul.msk.f32.gmra.mxu2 %vm238_vm1, %v222_v18 }
  0x39   : > { %3168 = vmatmul.msk.f32.gmra.mxu3 %vm238_vm1, %v231_v19  ;;  %3141 = vmatmul.msk.f32.gmra.mxu0 %vm238_vm1, %v204_v20  ;;  %v521_v19 = vld [vmem:[%s3783_s8 + $0x49] sm:$0xff]  ;;  %v1141_v20 = vld [vmem:[%s3783_s8 + $0x5a] sm:$0xff] }
  0x40   : > { %3151 = vmatmul.msk.f32.gmra.mxu1 %vm238_vm1, %v214_v21  ;;  %3160 = vmatmul.msk.f32.gmra.mxu2 %vm238_vm1, %v223_v22  ;;  %v1451_v22 = vld [vmem:[%s3783_s8 + $0x5b] sm:$0xff] }
  0x41   : > { %3169 = vmatmul.msk.f32.gmra.mxu3 %vm238_vm1, %v232_v23  ;;  %3142 = vmatmul.msk.f32.gmra.mxu0 %vm238_vm1, %v205_v24 }
  0x48   : > { %3152 = vmatmul.msk.f32.gmra.mxu1 %vm238_vm1, %v215_v25  ;;  %3161 = vmatmul.msk.f32.gmra.mxu2 %vm238_vm1, %v224_v26  ;;  %v522_v26 = vld [vmem:[%s3783_s8 + $0x51] sm:$0xff] }
  0x49   : > { %3170 = vmatmul.msk.f32.gmra.mxu3 %vm238_vm1, %v233_v27  ;;  %3143 = vmatmul.msk.f32.gmra.mxu0 %vm238_vm1, %v206_v28  ;;  %v1142_v27 = vld [vmem:[%s3783_s8 + $0x62] sm:$0xff] }
  0x50   : > { %3153 = vmatmul.msk.f32.gmra.mxu1 %vm238_vm1, %v216_v32  ;;  %3162 = vmatmul.msk.f32.gmra.mxu2 %vm238_vm1, %v225_v33  ;;  %v523_v33 = vld [vmem:[%s3783_s8 + $0x59] sm:$0xff] }
  0x51   : > { %3171 = vmatmul.msk.f32.gmra.mxu3 %vm238_vm1, %v234_v34  ;;  %3144 = vmatmul.msk.f32.gmra.mxu0 %vm238_vm1, %v207_v35  ;;  %v1143_v34 = vld [vmem:[%s3783_s8 + $0x6a] sm:$0xff] }
  0x58   : > { %3154 = vmatmul.msk.f32.gmra.mxu1 %vm238_vm1, %v217_v37  ;;  %3163 = vmatmul.msk.f32.gmra.mxu2 %vm238_vm1, %v226_v38 }
  0x59   : > { %3172 = vmatmul.msk.f32.gmra.mxu3 %vm238_vm1, %v235_v39  ;;  %3145 = vmatmul.msk.f32.gmra.mxu0 %vm238_vm1, %v208_v40  ;;  %v524_v40 = vld [vmem:[%s3783_s8 + $0x61] sm:$0xff] }
  0x60   : > { %3155 = vmatmul.msk.f32.gmra.mxu1 %vm238_vm1, %v218_v41  ;;  %3164 = vmatmul.msk.f32.gmra.mxu2 %vm238_vm1, %v227_v42  ;;  %v1144_v41 = vld [vmem:[%s3783_s8 + $0x72] sm:$0xff] }
  0x61   : > { %3173 = vmatmul.msk.f32.gmra.mxu3 %vm238_vm1, %v236_v43  ;;  %3146 = vmatmul.msk.f32.gmra.mxu0 %vm238_vm1, %v209_v44  ;;  %v1454_v43 = vld [vmem:[%s3783_s8 + $0x73] sm:$0xff] }
  0x68   : > { %3176 = vmatmul.msk.f32.vlgmr.msrb.gmra.mxu1 %vm238_vm1, %v512_v45  ;;  %3214 = vmatmul.msk.f32.vlgmr.msrb.gmra.mxu2 %vm238_vm1, %v822_v46 }
  0x69   : > { %3252 = vmatmul.msk.f32.vlgmr.msrb.gmra.mxu3 %vm238_vm1, %v1132_v47  ;;  %3290 = vmatmul.msk.f32.vlgmr.msrb.gmra.mxu0 %vm238_vm1, %v1442_v48  ;;  %v1145_v48 = vld [vmem:[%s3783_s8 + $0x7a] sm:$0xff] }
  0x70   : > { %3177 = vmatmul.msk.f32.gmra.mxu1 %vm238_vm1, %v513_v49  ;;  %3215 = vmatmul.msk.f32.gmra.mxu2 %vm238_vm1, %v823_v50  ;;  %v1455_v50 = vld [vmem:[%s3783_s8 + $0x7b] sm:$0xff] }
  0x71   : > { %3253 = vmatmul.msk.f32.gmra.mxu3 %vm238_vm1, %v1133_v51  ;;  %3291 = vmatmul.msk.f32.gmra.mxu0 %vm238_vm1, %v1443_v52 }
  0x78   : > { %3178 = vmatmul.msk.f32.gmra.mxu1 %vm238_vm1, %v514_v53  ;;  %3216 = vmatmul.msk.f32.gmra.mxu2 %vm238_vm1, %v1132_v47  ;;  %v525_v47 = vld [vmem:[%s3783_s8 + $0x69] sm:$0xff] }
  0x79   : > { %3254 = vmatmul.msk.f32.gmra.mxu3 %vm238_vm1, %v1134_v54  ;;  %3292 = vmatmul.msk.f32.gmra.mxu0 %vm238_vm1, %v1444_v55  ;;  %v1146_v55 = vld [vmem:[%s3783_s8 + $0x82] sm:$0xff] }
  0x80   : > { %3179 = vmatmul.msk.f32.gmra.mxu1 %vm238_vm1, %v515_v56  ;;  %3217 = vmatmul.msk.f32.gmra.mxu2 %vm238_vm1, %v1133_v51 }
  0x81   : > { %3255 = vmatmul.msk.f32.gmra.mxu3 %vm238_vm1, %v1135_v57  ;;  %3293 = vmatmul.msk.f32.gmra.mxu0 %vm238_vm1, %v1445_v58 }
  0x88   : > { %3180 = vmatmul.msk.f32.gmra.mxu1 %vm238_vm1, %v516_v59  ;;  %3218 = vmatmul.msk.f32.gmra.mxu2 %vm238_vm1, %v1134_v54  ;;  %v526_v54 = vld [vmem:[%s3783_s8 + $0x71] sm:$0xff] }
  0x89   : > { %3256 = vmatmul.msk.f32.gmra.mxu3 %vm238_vm1, %v1136_v60  ;;  %3294 = vmatmul.msk.f32.gmra.mxu0 %vm238_vm1, %v1446_v61  ;;  %v527_v61 = vld [vmem:[%s3783_s8 + $0x79] sm:$0xff] }
  0x90   : > { %3181 = vmatmul.msk.f32.gmra.mxu1 %vm238_vm1, %v517_v62  ;;  %3219 = vmatmul.msk.f32.gmra.mxu2 %vm238_vm1, %v1135_v57  ;;  %v1456_v57 = vld [vmem:[%s3783_s8 + $0x83] sm:$0xff] }
  0x91   : > { %3257 = vmatmul.msk.f32.gmra.mxu3 %vm238_vm1, %v1137_v63  ;;  %3295 = vmatmul.msk.f32.gmra.mxu0 %vm238_vm1, %v1447_v0  ;;  %v1147_v62 = vld [vmem:[%s3783_s8 + $0x8a] sm:$0xff] }
  0x92   : > { %v1457_v0 = vld [vmem:[%s3783_s8 + $0x8b] sm:$0xff] }
  0x98   : > { %3182 = vmatmul.msk.f32.gmra.mxu1 %vm238_vm1, %v518_v1  ;;  %3220 = vmatmul.msk.f32.gmra.mxu2 %vm238_vm1, %v1136_v60 }
  0x99   : > { %3258 = vmatmul.msk.f32.gmra.mxu3 %vm238_vm1, %v1138_v2  ;;  %3296 = vmatmul.msk.f32.gmra.mxu0 %vm238_vm1, %v1448_v3 }
  0x9d   : > { %v3924_v4 = vpop.f32.mrf.mxu1 }
  0x9e   : > { %v3928_v7 = vpop.f32.mrf.mxu0 }
  0xa0   : > { %3183 = vmatmul.msk.f32.gmra.mxu1 %vm238_vm1, %v519_v5  ;;  %3221 = vmatmul.msk.f32.gmra.mxu2 %vm238_vm1, %v1137_v63  ;;  %v528_v5 = vld [vmem:[%s3783_s8 + $0x81] sm:$0xff] }
  0xa1   : > { %3259 = vmatmul.msk.f32.gmra.mxu3 %vm238_vm1, %v1139_v6  ;;  %3297 = vmatmul.msk.f32.gmra.mxu0 %vm238_vm1, %v1449_v8  ;;  %v1148_v8 = vld [vmem:[%s3783_s8 + $0x92] sm:$0xff] }
  0xa3   : > { %v3935_v9 = vpop.f32.mrf.mxu2 }
  0xa4   : > { %v3937_v10 = vpop.f32.mrf.mxu3 }
  0xa5   : > { %v3939_v11 = vpop.f32.mrf.mxu1 }
  0xa6   : > { %v3943_v14 = vpop.f32.mrf.mxu0 }
  0xa8   : > { %3184 = vmatmul.msk.f32.gmra.mxu1 %vm238_vm1, %v520_v12  ;;  %3222 = vmatmul.msk.f32.gmra.mxu2 %vm238_vm1, %v1138_v2 }
  0xa9   : > { %3260 = vmatmul.msk.f32.gmra.mxu3 %vm238_vm1, %v1140_v13  ;;  %3298 = vmatmul.msk.f32.gmra.mxu0 %vm238_vm1, %v1450_v15 }
  0xab   : > { %v3950_v16 = vpop.f32.mrf.mxu2 }
  0xac   : > { %v3952_v17 = vpop.f32.mrf.mxu3 }
  0xad   : > { %v3954_v18 = vpop.f32.mrf.mxu1 }
  0xae   : > { %v3958_v21 = vpop.f32.mrf.mxu0 }
  0xb0   : > { %3185 = vmatmul.msk.f32.gmra.mxu1 %vm238_vm1, %v521_v19  ;;  %3223 = vmatmul.msk.f32.gmra.mxu2 %vm238_vm1, %v1139_v6  ;;  %v4063_v6 = vld [vmem:[%s4726_s2] ss:$0 sm:$0xff] }
  0xb1   : > { %3261 = vmatmul.msk.f32.gmra.mxu3 %vm238_vm1, %v1141_v20  ;;  %3299 = vmatmul.msk.f32.gmra.mxu0 %vm238_vm1, %v1451_v22  ;;  %v476_v15 = vadd.f32 %v4063_v6, %v3928_v7  ;;  %v1459_v7 = vld [vmem:[%s3783_s8 + $0x9b] sm:$0xff] }
  0xb3   : > { %v3965_v23 = vpop.f32.mrf.mxu2 }
  0xb4   : > { %v3967_v24 = vpop.f32.mrf.mxu3 }
  0xb5   : > { %v3969_v25 = vpop.f32.mrf.mxu1 }
  0xb6   : > { %v3973_v28 = vpop.f32.mrf.mxu0 }
  0xb8   : > { %3186 = vmatmul.msk.f32.gmra.mxu1 %vm238_vm1, %v522_v26  ;;  %3224 = vmatmul.msk.f32.gmra.mxu2 %vm238_vm1, %v1140_v13  ;;  %v1458_v13 = vld [vmem:[%s3783_s8 + $0x93] sm:$0xff] }
  0xb9   : > { %3262 = vmatmul.msk.f32.gmra.mxu3 %vm238_vm1, %v1142_v27  ;;  %3300 = vmatmul.msk.f32.gmra.mxu0 %vm238_vm1, %v1452_v29  ;;  %v529_v29 = vld [vmem:[%s3783_s8 + $0x89] sm:$0xff] }
  0xbb   : > { %v3980_v30 = vpop.f32.mrf.mxu2 }
  0xbc   : > { %v3982_v31 = vpop.f32.mrf.mxu3 }
  0xbd   : > { %v3984_v32 = vpop.f32.mrf.mxu1 }
  0xbe   : > { %v3988_v35 = vpop.f32.mrf.mxu0 }
  0xc0   : > { %3187 = vmatmul.msk.f32.gmra.mxu1 %vm238_vm1, %v523_v33  ;;  %3225 = vmatmul.msk.f32.gmra.mxu2 %vm238_vm1, %v1141_v20 }
  0xc1   : > { %3263 = vmatmul.msk.f32.gmra.mxu3 %vm238_vm1, %v1143_v34  ;;  %3301 = vmatmul.msk.f32.gmra.mxu0 %vm238_vm1, %v1453_v36 }
  0xc3   : > { %v3995_v37 = vpop.f32.mrf.mxu2 }
  0xc4   : > { %v3997_v38 = vpop.f32.mrf.mxu3 }
  0xc5   : > { %v3999_v39 = vpop.f32.mrf.mxu1 }
  0xc6   : > { %v4003_v42 = vpop.f32.mrf.mxu0 }
  0xc8   : > { %3188 = vmatmul.msk.f32.gmra.mxu1 %vm238_vm1, %v524_v40  ;;  %3226 = vmatmul.msk.f32.gmra.mxu2 %vm238_vm1, %v1142_v27  ;;  %v477_v40 = vadd.f32 %v4063_v6, %v3943_v14 }
  0xc9   : > { %3264 = vmatmul.msk.f32.gmra.mxu3 %vm238_vm1, %v1144_v41  ;;  %3302 = vmatmul.msk.f32.gmra.mxu0 %vm238_vm1, %v1454_v43 }
  0xcb   : > { %v4010_v44 = vpop.f32.mrf.mxu2 }
  0xcc   : > { %v4012_v45 = vpop.f32.mrf.mxu3 }
  0xcd   : > { %v4014_v46 = vpop.f32.mrf.mxu1 }
  0xce   : > { %v4018_v49 = vpop.f32.mrf.mxu0 }
  0xd0   : > { %3189 = vmatmul.msk.f32.gmra.mxu1 %vm238_vm1, %v525_v47  ;;  %3227 = vmatmul.msk.f32.gmra.mxu2 %vm238_vm1, %v1143_v34  ;;  %v1149_v34 = vld [vmem:[%s3783_s8 + $0x9a] sm:$0xff] }
  0xd1   : > { %3265 = vmatmul.msk.f32.gmra.mxu3 %vm238_vm1, %v1145_v48  ;;  %3303 = vmatmul.msk.f32.gmra.mxu0 %vm238_vm1, %v1455_v50 }
  0xd3   : > { %v4025_v51 = vpop.f32.mrf.mxu2 }
  0xd4   : > { %v4027_v52 = vpop.f32.mrf.mxu3 }
  0xd5   : > { %v4029_v53 = vpop.f32.mrf.mxu1 }
  0xd6   : > { %v4033_v56 = vpop.f32.mrf.mxu0 }
  0xd8   : > { %3190 = vmatmul.msk.f32.gmra.mxu1 %vm238_vm1, %v526_v54  ;;  %3228 = vmatmul.msk.f32.gmra.mxu2 %vm238_vm1, %v1144_v41 }
  0xd9   : > { %3266 = vmatmul.msk.f32.gmra.mxu3 %vm238_vm1, %v1146_v55  ;;  %3304 = vmatmul.msk.f32.gmra.mxu0 %vm238_vm1, %v1456_v57 }
  0xdb   : > { %v4040_v58 = vpop.f32.mrf.mxu2 }
  0xdc   : > { %v4042_v59 = vpop.f32.mrf.mxu3 }
  0xdd   : > { %v4044_v60 = vpop.f32.mrf.mxu1 }
  0xde   : > { %v4048_v63 = vpop.f32.mrf.mxu0 }
  0xe0   : > { %3191 = vmatmul.msk.f32.gmra.mxu1 %vm238_vm1, %v527_v61  ;;  %3229 = vmatmul.msk.f32.gmra.mxu2 %vm238_vm1, %v1145_v48  ;;  %v1150_v61 = vld [vmem:[%s3783_s8 + $0xa2] sm:$0xff] }
  0xe1   : > { %3267 = vmatmul.msk.f32.gmra.mxu3 %vm238_vm1, %v1147_v62  ;;  %3305 = vmatmul.msk.f32.gmra.mxu0 %vm238_vm1, %v1457_v0  ;;  %v1460_v0 = vld [vmem:[%s3783_s8 + $0xa3] sm:$0xff] }
  0xe3   : > { %v4055_v1 = vpop.f32.mrf.mxu2 }
  0xe4   : > { %v4057_v2 = vpop.f32.mrf.mxu3 }
  0xe5   : > { %v678_v3 = vpop.f32.mrf.mxu1 }
  0xe6   : > { %v1608_v12 = vpop.f32.mrf.mxu0  ;;  %v786_v19 = vadd.f32 %v678_v3, %v476_v15 }
  0xe8   : > { %3192 = vmatmul.msk.f32.gmra.mxu1 %vm238_vm1, %v528_v5  ;;  %3230 = vmatmul.msk.f32.gmra.mxu2 %vm238_vm1, %v1146_v55  ;;  %v530_v55 = vld [vmem:[%s3783_s8 + $0x91] sm:$0xff] }
  0xe9   : > { %3268 = vmatmul.msk.f32.gmra.mxu3 %vm238_vm1, %v1148_v8  ;;  %3306 = vmatmul.msk.f32.gmra.mxu0 %vm238_vm1, %v1458_v13 }
  0xeb   : > { %v988_v20 = vpop.f32.mrf.mxu2 }
  0xec   : > { %v1096_v22 = vadd.f32 %v988_v20, %v786_v19  ;;  %v1298_v26 = vpop.f32.mrf.mxu3  ;;  %v531_v20 = vld [vmem:[%s3783_s8 + $0x99] sm:$0xff] }
  0xed   : > { %v681_v27 = vpop.f32.mrf.mxu1 }
  0xee   : > { %v1406_v33 = vadd.f32 %v1298_v26, %v1096_v22  ;;  %v1611_v36 = vpop.f32.mrf.mxu0  ;;  %v787_v43 = vadd.f32 %v681_v27, %v477_v40  ;;  %v1151_v26 = vld [vmem:[%s3783_s8 + $0xaa] sm:$0xff] }
  0xef   : > { %v1461_v27 = vld [vmem:[%s3783_s8 + $0xab] sm:$0xff] }
  0xf0   : > { %v4078_v41 = vadd.f32 %v1608_v12, %v1406_v33  ;;  %3193 = vmatmul.msk.f32.gmra.mxu1 %vm238_vm1, %v529_v29  ;;  %3231 = vmatmul.msk.f32.gmra.mxu2 %vm238_vm1, %v1147_v62  ;;  %v478_v62 = vadd.f32 %v4063_v6, %v3958_v21 }
  0xf1   : > { %3269 = vmatmul.msk.f32.gmra.mxu3 %vm238_vm1, %v1149_v34  ;;  %3307 = vmatmul.msk.f32.gmra.mxu0 %vm238_vm1, %v1459_v7 }
  0xf3   : > { %v991_v47 = vpop.f32.mrf.mxu2 }
  0xf4   : > { %v1097_v48 = vadd.f32 %v991_v47, %v787_v43  ;;  %v1301_v50 = vpop.f32.mrf.mxu3  ;;  %v532_v47 = vld [vmem:[%s3783_s8 + $0xa1] sm:$0xff] }
  0xf5   : > { %v684_v54 = vpop.f32.mrf.mxu1 }
  0xf6   : > { %v1407_v57 = vadd.f32 %v1301_v50, %v1097_v48  ;;  %v1614_v14 = vpop.f32.mrf.mxu0  ;;  %v788_v5 = vadd.f32 %v684_v54, %v478_v62  ;;  %v1152_v50 = vld [vmem:[%s3783_s8 + $0xb2] sm:$0xff] }
  0xf7   : > { %v1462_v54 = vld [vmem:[%s3783_s8 + $0xb3] sm:$0xff] }
  0xf8   : > { %v4089_v3 = vadd.f32 %v1611_v36, %v1407_v57  ;;  %3194 = vmatmul.msk.f32.gmra.mxu1 %vm238_vm1, %v530_v55  ;;  %3232 = vmatmul.msk.f32.gmra.mxu2 %vm238_vm1, %v1148_v8  ;;  %v479_v8 = vadd.f32 %v4063_v6, %v3973_v28 }
  0xf9   : > { %3270 = vmatmul.msk.f32.gmra.mxu3 %vm238_vm1, %v1150_v61  ;;  %3308 = vmatmul.msk.f32.gmra.mxu0 %vm238_vm1, %v1460_v0 }
  0xfb   : > { %v994_v12 = vpop.f32.mrf.mxu2 }
  0xfc   : > { %v1098_v13 = vadd.f32 %v994_v12, %v788_v5  ;;  %v1304_v15 = vpop.f32.mrf.mxu3  ;;  %v533_v12 = vld [vmem:[%s3783_s8 + $0xa9] sm:$0xff] }
  0xfd   : > { %v687_v19 = vpop.f32.mrf.mxu1 }
  0xfe   : > { %v1408_v22 = vadd.f32 %v1304_v15, %v1098_v13  ;;  %v1617_v21 = vpop.f32.mrf.mxu0  ;;  %v789_v33 = vadd.f32 %v687_v19, %v479_v8  ;;  %v1153_v15 = vld [vmem:[%s3783_s8 + $0xba] sm:$0xff] }
  0xff   : > { %v1463_v19 = vld [vmem:[%s3783_s8 + $0xbb] sm:$0xff] }
 0x100   : > { %v4100_v29 = vadd.f32 %v1614_v14, %v1408_v22  ;;  %3195 = vmatmul.msk.f32.gmra.mxu1 %vm238_vm1, %v531_v20  ;;  %3233 = vmatmul.msk.f32.gmra.mxu2 %vm238_vm1, %v1149_v34  ;;  %v480_v34 = vadd.f32 %v4063_v6, %v3988_v35 }
 0x101   : > { %3271 = vmatmul.msk.f32.gmra.mxu3 %vm238_vm1, %v1151_v26  ;;  %3309 = vmatmul.msk.f32.gmra.mxu0 %vm238_vm1, %v1461_v27 }
 0x103   : > { %v997_v36 = vpop.f32.mrf.mxu2 }
 0x104   : > { %v1099_v7 = vadd.f32 %v997_v36, %v789_v33  ;;  %v1307_v40 = vpop.f32.mrf.mxu3  ;;  %v534_v36 = vld [vmem:[%s3783_s8 + $0xb1] sm:$0xff] }
 0x105   : > { %v690_v43 = vpop.f32.mrf.mxu1 }
 0x106   : > { %v1409_v48 = vadd.f32 %v1307_v40, %v1099_v7  ;;  %v1620_v28 = vpop.f32.mrf.mxu0  ;;  %v790_v57 = vadd.f32 %v690_v43, %v480_v34  ;;  %v1154_v40 = vld [vmem:[%s3783_s8 + $0xc2] sm:$0xff] }
 0x107   : > { %v1464_v43 = vld [vmem:[%s3783_s8 + $0xc3] sm:$0xff] }
 0x108   : > { %v4111_v55 = vadd.f32 %v1617_v21, %v1409_v48  ;;  %3196 = vmatmul.msk.f32.gmra.mxu1 %vm238_vm1, %v532_v47  ;;  %3234 = vmatmul.msk.f32.gmra.mxu2 %vm238_vm1, %v1150_v61  ;;  %v481_v61 = vadd.f32 %v4063_v6, %v4003_v42 }
 0x109   : > { %3272 = vmatmul.msk.f32.gmra.mxu3 %vm238_vm1, %v1152_v50  ;;  %3310 = vmatmul.msk.f32.gmra.mxu0 %vm238_vm1, %v1462_v54 }
 0x10b   : > { %v1000_v14 = vpop.f32.mrf.mxu2 }
 0x10c   : > { %v1100_v0 = vadd.f32 %v1000_v14, %v790_v57  ;;  %v1310_v62 = vpop.f32.mrf.mxu3  ;;  %v535_v14 = vld [vmem:[%s3783_s8 + $0xb9] sm:$0xff] }
 0x10d   : > { %v693_v5 = vpop.f32.mrf.mxu1 }
 0x10e   : > { %v1410_v13 = vadd.f32 %v1310_v62, %v1100_v0  ;;  %v1623_v35 = vpop.f32.mrf.mxu0  ;;  %v791_v22 = vadd.f32 %v693_v5, %v481_v61  ;;  %v1155_v62 = vld [vmem:[%s3783_s8 + $0xca] sm:$0xff] }
 0x10f   : > { %v1465_v5 = vld [vmem:[%s3783_s8 + $0xcb] sm:$0xff] }
 0x110   : > { %v4122_v20 = vadd.f32 %v1620_v28, %v1410_v13  ;;  %3197 = vmatmul.msk.f32.gmra.mxu1 %vm238_vm1, %v533_v12  ;;  %3235 = vmatmul.msk.f32.gmra.mxu2 %vm238_vm1, %v1151_v26  ;;  %v482_v26 = vadd.f32 %v4063_v6, %v4018_v49 }
 0x111   : > { %3273 = vmatmul.msk.f32.gmra.mxu3 %vm238_vm1, %v1153_v15  ;;  %3311 = vmatmul.msk.f32.gmra.mxu0 %vm238_vm1, %v1463_v19 }
 0x113   : > { %v1003_v21 = vpop.f32.mrf.mxu2 }
 0x114   : > { %v1101_v27 = vadd.f32 %v1003_v21, %v791_v22  ;;  %v1313_v8 = vpop.f32.mrf.mxu3  ;;  %v536_v21 = vld [vmem:[%s3783_s8 + $0xc1] sm:$0xff] }
 0x115   : > { %v696_v33 = vpop.f32.mrf.mxu1 }
 0x116   : > { %v1411_v7 = vadd.f32 %v1313_v8, %v1101_v27  ;;  %v1626_v42 = vpop.f32.mrf.mxu0  ;;  %v792_v48 = vadd.f32 %v696_v33, %v482_v26  ;;  %v1156_v8 = vld [vmem:[%s3783_s8 + $0xd2] sm:$0xff] }
 0x117   : > { %v1466_v33 = vld [vmem:[%s3783_s8 + $0xd3] sm:$0xff] }
 0x118   : > { %v4133_v47 = vadd.f32 %v1623_v35, %v1411_v7  ;;  %3198 = vmatmul.msk.f32.gmra.mxu1 %vm238_vm1, %v534_v36  ;;  %3236 = vmatmul.msk.f32.gmra.mxu2 %vm238_vm1, %v1152_v50  ;;  %v483_v50 = vadd.f32 %v4063_v6, %v4033_v56 }
 0x119   : > { %3274 = vmatmul.msk.f32.gmra.mxu3 %vm238_vm1, %v1154_v40  ;;  %3312 = vmatmul.msk.f32.gmra.mxu0 %vm238_vm1, %v1464_v43 }
 0x11b   : > { %v1006_v28 = vpop.f32.mrf.mxu2 }
 0x11c   : > { %v1102_v54 = vadd.f32 %v1006_v28, %v792_v48  ;;  %v1316_v34 = vpop.f32.mrf.mxu3  ;;  %v537_v28 = vld [vmem:[%s3783_s8 + $0xc9] sm:$0xff] }
 0x11d   : > { %v699_v57 = vpop.f32.mrf.mxu1 }
 0x11e   : > { %v1412_v0 = vadd.f32 %v1316_v34, %v1102_v54  ;;  %v1629_v49 = vpop.f32.mrf.mxu0  ;;  %v793_v13 = vadd.f32 %v699_v57, %v483_v50  ;;  %v1157_v34 = vld [vmem:[%s3783_s8 + $0xda] sm:$0xff] }
 0x11f   : > { %v1467_v57 = vld [vmem:[%s3783_s8 + $0xdb] sm:$0xff] }
 0x120   : > { %v4144_v12 = vadd.f32 %v1626_v42, %v1412_v0  ;;  %3199 = vmatmul.msk.f32.gmra.mxu1 %vm238_vm1, %v535_v14  ;;  %3237 = vmatmul.msk.f32.gmra.mxu2 %vm238_vm1, %v1153_v15  ;;  %v484_v15 = vadd.f32 %v4063_v6, %v4048_v63 }
 0x121   : > { %3275 = vmatmul.msk.f32.gmra.mxu3 %vm238_vm1, %v1155_v62  ;;  %3313 = vmatmul.msk.f32.gmra.mxu0 %vm238_vm1, %v1465_v5 }
 0x123   : > { %v1009_v35 = vpop.f32.mrf.mxu2 }
 0x124   : > { %v1103_v19 = vadd.f32 %v1009_v35, %v793_v13  ;;  %v1319_v61 = vpop.f32.mrf.mxu3  ;;  %v538_v35 = vld [vmem:[%s3783_s8 + $0xd1] sm:$0xff] }
 0x125   : > { %v702_v22 = vpop.f32.mrf.mxu1 }
 0x126   : > { %v1413_v27 = vadd.f32 %v1319_v61, %v1103_v19  ;;  %v1632_v56 = vpop.f32.mrf.mxu0  ;;  %v794_v7 = vadd.f32 %v702_v22, %v484_v15  ;;  %v1158_v61 = vld [vmem:[%s3783_s8 + $0xe2] sm:$0xff] }
 0x127   : > { %v1468_v22 = vld [vmem:[%s3783_s8 + $0xe3] sm:$0xff] }
 0x128   : > { %v4155_v36 = vadd.f32 %v1629_v49, %v1413_v27  ;;  %3200 = vmatmul.msk.f32.gmra.mxu1 %vm238_vm1, %v536_v21  ;;  %3238 = vmatmul.msk.f32.gmra.mxu2 %vm238_vm1, %v1154_v40  ;;  %v485_v40 = vadd.f32 %v4063_v6, %v3924_v4 }
 0x129   : > { %3276 = vmatmul.msk.f32.gmra.mxu3 %vm238_vm1, %v1156_v8  ;;  %3314 = vmatmul.msk.f32.gmra.mxu0 %vm238_vm1, %v1466_v33 }
 0x12b   : > { %v1012_v42 = vpop.f32.mrf.mxu2 }
 0x12c   : > { %v1104_v43 = vadd.f32 %v1012_v42, %v794_v7  ;;  %v1322_v26 = vpop.f32.mrf.mxu3  ;;  %v539_v42 = vld [vmem:[%s3783_s8 + $0xd9] sm:$0xff] }
 0x12d   : > { %v705_v48 = vpop.f32.mrf.mxu1 }
 0x12e   : > { %v1414_v54 = vadd.f32 %v1322_v26, %v1104_v43  ;;  %v1635_v63 = vpop.f32.mrf.mxu0  ;;  %v795_v0 = vadd.f32 %v705_v48, %v485_v40  ;;  %v1159_v26 = vld [vmem:[%s3783_s8 + $0xea] sm:$0xff] }
 0x12f   : > { %v1469_v48 = vld [vmem:[%s3783_s8 + $0xeb] sm:$0xff] }
 0x130   : > { %v4166_v14 = vadd.f32 %v1632_v56, %v1414_v54  ;;  %3201 = vmatmul.msk.f32.gmra.mxu1 %vm238_vm1, %v537_v28  ;;  %3239 = vmatmul.msk.f32.gmra.mxu2 %vm238_vm1, %v1155_v62  ;;  %v486_v62 = vadd.f32 %v4063_v6, %v3939_v11 }
 0x131   : > { %3277 = vmatmul.msk.f32.gmra.mxu3 %vm238_vm1, %v1157_v34  ;;  %3315 = vmatmul.msk.f32.gmra.mxu0 %vm238_vm1, %v1467_v57 }
 0x133   : > { %v1015_v49 = vpop.f32.mrf.mxu2 }
 0x134   : > { %v1105_v5 = vadd.f32 %v1015_v49, %v795_v0  ;;  %v1325_v50 = vpop.f32.mrf.mxu3  ;;  %v540_v49 = vld [vmem:[%s3783_s8 + $0xe1] sm:$0xff] }
 0x135   : > { %v708_v13 = vpop.f32.mrf.mxu1 }
 0x136   : > { %v1415_v19 = vadd.f32 %v1325_v50, %v1105_v5  ;;  %v1638_v4 = vpop.f32.mrf.mxu0  ;;  %v796_v27 = vadd.f32 %v708_v13, %v486_v62  ;;  %v1160_v50 = vld [vmem:[%s3783_s8 + $0xf2] sm:$0xff] }
 0x137   : > { %v1470_v13 = vld [vmem:[%s3783_s8 + $0xf3] sm:$0xff] }
 0x138   : > { %v4177_v21 = vadd.f32 %v1635_v63, %v1415_v19  ;;  %3202 = vmatmul.msk.f32.gmra.mxu1 %vm238_vm1, %v538_v35  ;;  %3240 = vmatmul.msk.f32.gmra.mxu2 %vm238_vm1, %v1156_v8  ;;  %v487_v8 = vadd.f32 %v4063_v6, %v3954_v18 }
 0x139   : > { %3278 = vmatmul.msk.f32.gmra.mxu3 %vm238_vm1, %v1158_v61  ;;  %3316 = vmatmul.msk.f32.gmra.mxu0 %vm238_vm1, %v1468_v22 }
 0x13b   : > { %v1018_v56 = vpop.f32.mrf.mxu2 }
 0x13c   : > { %v1106_v33 = vadd.f32 %v1018_v56, %v796_v27  ;;  %v1328_v15 = vpop.f32.mrf.mxu3  ;;  %v541_v56 = vld [vmem:[%s3783_s8 + $0xe9] sm:$0xff] }
 0x13d   : > { %v711_v7 = vpop.f32.mrf.mxu1 }
 0x13e   : > { %v1416_v43 = vadd.f32 %v1328_v15, %v1106_v33  ;;  %v1641_v11 = vpop.f32.mrf.mxu0  ;;  %v797_v54 = vadd.f32 %v711_v7, %v487_v8  ;;  %v1161_v15 = vld [vmem:[%s3783_s8 + $0xfa] sm:$0xff] }
 0x13f   : > { %v1471_v7 = vld [vmem:[%s3783_s8 + $0xfb] sm:$0xff] }
 0x140   : > { %v4188_v28 = vadd.f32 %v1638_v4, %v1416_v43  ;;  %3203 = vmatmul.msk.f32.gmra.mxu1 %vm238_vm1, %v539_v42  ;;  %3241 = vmatmul.msk.f32.gmra.mxu2 %vm238_vm1, %v1157_v34  ;;  %v488_v34 = vadd.f32 %v4063_v6, %v3969_v25 }
 0x141   : > { %3279 = vmatmul.msk.f32.gmra.mxu3 %vm238_vm1, %v1159_v26  ;;  %3317 = vmatmul.msk.f32.gmra.mxu0 %vm238_vm1, %v1469_v48 }
 0x143   : > { %v1021_v63 = vpop.f32.mrf.mxu2 }
 0x144   : > { %v1107_v57 = vadd.f32 %v1021_v63, %v797_v54  ;;  %v1331_v40 = vpop.f32.mrf.mxu3  ;;  %v542_v63 = vld [vmem:[%s3783_s8 + $0xf1] sm:$0xff] }
 0x145   : > { %v714_v0 = vpop.f32.mrf.mxu1 }
 0x146   : > { %v1417_v5 = vadd.f32 %v1331_v40, %v1107_v57  ;;  %v1644_v18 = vpop.f32.mrf.mxu0  ;;  %v798_v19 = vadd.f32 %v714_v0, %v488_v34  ;;  %v1162_v40 = vld [vmem:[%s3783_s8 + $0x102] sm:$0xff] }
 0x147   : > { %v1472_v0 = vld [vmem:[%s3783_s8 + $0x103] sm:$0xff] }
 0x148   : > { %v4199_v35 = vadd.f32 %v1641_v11, %v1417_v5  ;;  %3204 = vmatmul.msk.f32.gmra.mxu1 %vm238_vm1, %v540_v49  ;;  %3242 = vmatmul.msk.f32.gmra.mxu2 %vm238_vm1, %v1158_v61  ;;  %v489_v61 = vadd.f32 %v4063_v6, %v3984_v32 }
 0x149   : > { %3280 = vmatmul.msk.f32.gmra.mxu3 %vm238_vm1, %v1160_v50  ;;  %3318 = vmatmul.msk.f32.gmra.mxu0 %vm238_vm1, %v1470_v13 }
 0x14b   : > { %v1024_v4 = vpop.f32.mrf.mxu2 }
 0x14c   : > { %v1108_v22 = vadd.f32 %v1024_v4, %v798_v19  ;;  %v1334_v62 = vpop.f32.mrf.mxu3  ;;  %v543_v4 = vld [vmem:[%s3783_s8 + $0xf9] sm:$0xff] }
 0x14d   : > { %v717_v27 = vpop.f32.mrf.mxu1 }
 0x14e   : > { %v1418_v33 = vadd.f32 %v1334_v62, %v1108_v22  ;;  %v1647_v25 = vpop.f32.mrf.mxu0  ;;  %v799_v43 = vadd.f32 %v717_v27, %v489_v61  ;;  %v1163_v62 = vld [vmem:[%s3783_s8 + $0x10a] sm:$0xff] }
 0x14f   : > { %v1473_v27 = vld [vmem:[%s3783_s8 + $0x10b] sm:$0xff] }
 0x150   : > { %v4210_v42 = vadd.f32 %v1644_v18, %v1418_v33  ;;  %3205 = vmatmul.msk.f32.gmra.mxu1 %vm238_vm1, %v541_v56  ;;  %3243 = vmatmul.msk.f32.gmra.mxu2 %vm238_vm1, %v1159_v26  ;;  %v490_v26 = vadd.f32 %v4063_v6, %v3999_v39 }
 0x151   : > { %3281 = vmatmul.msk.f32.gmra.mxu3 %vm238_vm1, %v1161_v15  ;;  %3319 = vmatmul.msk.f32.gmra.mxu0 %vm238_vm1, %v1471_v7 }
 0x153   : > { %v1027_v11 = vpop.f32.mrf.mxu2 }
 0x154   : > { %v1109_v48 = vadd.f32 %v1027_v11, %v799_v43  ;;  %v1337_v8 = vpop.f32.mrf.mxu3  ;;  %v544_v11 = vld [vmem:[%s3783_s8 + $0x101] sm:$0xff] }
 0x155   : > { %v720_v54 = vpop.f32.mrf.mxu1 }
 0x156   : > { %v1419_v57 = vadd.f32 %v1337_v8, %v1109_v48  ;;  %v1650_v32 = vpop.f32.mrf.mxu0  ;;  %v800_v5 = vadd.f32 %v720_v54, %v490_v26  ;;  %v1164_v8 = vld [vmem:[%s3783_s8 + $0x112] sm:$0xff] }
 0x157   : > { %v1474_v54 = vld [vmem:[%s3783_s8 + $0x113] sm:$0xff] }
 0x158   : > { %v4221_v49 = vadd.f32 %v1647_v25, %v1419_v57  ;;  %3206 = vmatmul.msk.f32.gmra.mxu1 %vm238_vm1, %v542_v63  ;;  %3244 = vmatmul.msk.f32.gmra.mxu2 %vm238_vm1, %v1160_v50  ;;  %v491_v50 = vadd.f32 %v4063_v6, %v4014_v46 }
 0x159   : > { %3282 = vmatmul.msk.f32.gmra.mxu3 %vm238_vm1, %v1162_v40  ;;  %3320 = vmatmul.msk.f32.gmra.mxu0 %vm238_vm1, %v1472_v0 }
 0x15b   : > { %v1030_v18 = vpop.f32.mrf.mxu2 }
 0x15c   : > { %v1110_v13 = vadd.f32 %v1030_v18, %v800_v5  ;;  %v1340_v34 = vpop.f32.mrf.mxu3  ;;  %v545_v18 = vld [vmem:[%s3783_s8 + $0x109] sm:$0xff] }
 0x15d   : > { %v723_v19 = vpop.f32.mrf.mxu1 }
 0x15e   : > { %v1420_v22 = vadd.f32 %v1340_v34, %v1110_v13  ;;  %v1653_v39 = vpop.f32.mrf.mxu0  ;;  %v801_v33 = vadd.f32 %v723_v19, %v491_v50  ;;  %v1165_v34 = vld [vmem:[%s3783_s8 + $0x11a] sm:$0xff] }
 0x15f   : > { %v1475_v19 = vld [vmem:[%s3783_s8 + $0x11b] sm:$0xff] }
 0x160   : > { %v4232_v56 = vadd.f32 %v1650_v32, %v1420_v22  ;;  %3207 = vmatmul.msk.f32.gmra.mxu1 %vm238_vm1, %v543_v4  ;;  %3245 = vmatmul.msk.f32.gmra.mxu2 %vm238_vm1, %v1161_v15  ;;  %v492_v15 = vadd.f32 %v4063_v6, %v4029_v53 }
 0x161   : > { %3283 = vmatmul.msk.f32.gmra.mxu3 %vm238_vm1, %v1163_v62  ;;  %3321 = vmatmul.msk.f32.gmra.mxu0 %vm238_vm1, %v1473_v27 }
 0x163   : > { %v1033_v25 = vpop.f32.mrf.mxu2 }
 0x164   : > { %v1111_v7 = vadd.f32 %v1033_v25, %v801_v33  ;;  %v1343_v61 = vpop.f32.mrf.mxu3  ;;  %v546_v25 = vld [vmem:[%s3783_s8 + $0x111] sm:$0xff] }
 0x165   : > { %v726_v43 = vpop.f32.mrf.mxu1 }
 0x166   : > { %v1421_v48 = vadd.f32 %v1343_v61, %v1111_v7  ;;  %v1656_v46 = vpop.f32.mrf.mxu0  ;;  %v802_v57 = vadd.f32 %v726_v43, %v492_v15  ;;  %v1166_v61 = vld [vmem:[%s3783_s8 + $0x122] sm:$0xff] }
 0x167   : > { %v1476_v43 = vld [vmem:[%s3783_s8 + $0x123] sm:$0xff] }
 0x168   : > { %v4243_v63 = vadd.f32 %v1653_v39, %v1421_v48  ;;  %3208 = vmatmul.msk.f32.gmra.mxu1 %vm238_vm1, %v544_v11  ;;  %3246 = vmatmul.msk.f32.gmra.mxu2 %vm238_vm1, %v1162_v40  ;;  %v493_v40 = vadd.f32 %v4063_v6, %v4044_v60 }
 0x169   : > { %3284 = vmatmul.msk.f32.gmra.mxu3 %vm238_vm1, %v1164_v8  ;;  %3322 = vmatmul.msk.f32.gmra.mxu0 %vm238_vm1, %v1474_v54 }
 0x16b   : > { %v1036_v32 = vpop.f32.mrf.mxu2 }
 0x16c   : > { %v1112_v0 = vadd.f32 %v1036_v32, %v802_v57  ;;  %v1346_v26 = vpop.f32.mrf.mxu3  ;;  %v547_v32 = vld [vmem:[%s3783_s8 + $0x119] sm:$0xff] }
 0x16d   : > { %v729_v5 = vpop.f32.mrf.mxu1 }
 0x16e   : > { %v1422_v13 = vadd.f32 %v1346_v26, %v1112_v0  ;;  %v1659_v53 = vpop.f32.mrf.mxu0  ;;  %v803_v22 = vadd.f32 %v729_v5, %v493_v40  ;;  %v1477_v5 = vld [vmem:[%s3783_s8 + $0x12b] sm:$0xff] }
 0x170   : > { %v4254_v4 = vadd.f32 %v1656_v46, %v1422_v13  ;;  %3209 = vmatmul.msk.f32.gmra.mxu1 %vm238_vm1, %v545_v18  ;;  %3247 = vmatmul.msk.f32.gmra.mxu2 %vm238_vm1, %v1163_v62  ;;  %v494_v62 = vadd.f32 %v4063_v6, %v3935_v9  ;;  %v1167_v9 = vld [vmem:[%s3783_s8 + $0x12a] sm:$0xff] }
 0x171   : > { %3285 = vmatmul.msk.f32.gmra.mxu3 %vm238_vm1, %v1165_v34  ;;  %3323 = vmatmul.msk.f32.gmra.mxu0 %vm238_vm1, %v1475_v19 }
 0x173   : > { %v1039_v39 = vpop.f32.mrf.mxu2 }
 0x174   : > { %v1113_v27 = vadd.f32 %v1039_v39, %v803_v22  ;;  %v1349_v50 = vpop.f32.mrf.mxu3  ;;  %v1752_v39 = vld [vmem:[%s3783_s8 + $0x14] sm:$0xff] }
 0x175   : > { %v732_v33 = vpop.f32.mrf.mxu1 }
 0x176   : > { %v1423_v7 = vadd.f32 %v1349_v50, %v1113_v27  ;;  %v1662_v60 = vpop.f32.mrf.mxu0  ;;  %v804_v48 = vadd.f32 %v732_v33, %v494_v62  ;;  %v2062_v27 = vld [vmem:[%s3783_s8 + $0x24] sm:$0xff] }
 0x177   : > { %v2372_v50 = vld [vmem:[%s3783_s8 + $0x25] sm:$0xff] }
 0x178   : > { %v4265_v11 = vadd.f32 %v1659_v53, %v1423_v7  ;;  %3210 = vmatmul.msk.f32.gmra.mxu1 %vm238_vm1, %v546_v25  ;;  %3248 = vmatmul.msk.f32.gmra.mxu2 %vm238_vm1, %v1164_v8  ;;  %v495_v8 = vadd.f32 %v4063_v6, %v3950_v16  ;;  %v2682_v25 = vld [vmem:[%s3783_s8 + $0x26] sm:$0xff] }
 0x179   : > { %3286 = vmatmul.msk.f32.gmra.mxu3 %vm238_vm1, %v1166_v61  ;;  %3324 = vmatmul.msk.f32.gmra.mxu0 %vm238_vm1, %v1476_v43 }
 0x17b   : > { %v1042_v46 = vpop.f32.mrf.mxu2 }
 0x17c   : > { %v1114_v54 = vadd.f32 %v1042_v46, %v804_v48  ;;  %v1352_v15 = vpop.f32.mrf.mxu3  ;;  %v1753_v46 = vld [vmem:[%s3783_s8 + $0x1c] sm:$0xff] }
 0x17d   : > { %v735_v57 = vpop.f32.mrf.mxu1 }
 0x17e   : > { %v1424_v0 = vadd.f32 %v1352_v15, %v1114_v54  ;;  %v1665_v26 = vpop.f32.mrf.mxu0  ;;  %v805_v13 = vadd.f32 %v735_v57, %v495_v8  ;;  %v2063_v54 = vld [vmem:[%s3783_s8 + $0x2c] sm:$0xff] }
 0x17f   : > { %v2373_v15 = vld [vmem:[%s3783_s8 + $0x2d] sm:$0xff] }
 0x180   : > { %v4276_v18 = vadd.f32 %v1662_v60, %v1424_v0  ;;  %3211 = vmatmul.msk.f32.gmra.mxu1 %vm238_vm1, %v547_v32  ;;  %3249 = vmatmul.msk.f32.gmra.mxu2 %vm238_vm1, %v1165_v34  ;;  %v496_v34 = vadd.f32 %v4063_v6, %v3965_v23  ;;  %v2683_v32 = vld [vmem:[%s3783_s8 + $0x2e] sm:$0xff]  ;;  %v497_v0 = vadd.f32 %v4063_v6, %v3980_v30 }
 0x181   : > { %3287 = vmatmul.msk.f32.gmra.mxu3 %vm238_vm1, %v1167_v9  ;;  %3325 = vmatmul.msk.f32.gmra.mxu0 %vm238_vm1, %v1477_v5 }
 0x183   : > { %v1045_v53 = vpop.f32.mrf.mxu2 }
 0x184   : > { %v1115_v19 = vadd.f32 %v1045_v53, %v805_v13  ;;  %v1355_v40 = vpop.f32.mrf.mxu3 }
 0x185   : > { %v738_v22 = vpop.f32.mrf.mxu1 }
 0x186   : > { %v1425_v16 = vadd.f32 %v1355_v40, %v1115_v19  ;;  %v1668_v33 = vpop.f32.mrf.mxu0  ;;  %v806_v61 = vadd.f32 %v738_v22, %v496_v34  ;;  %v2064_v19 = vld [vmem:[%s3783_s8 + $0x34] sm:$0xff] }
 0x187   : > { %v2374_v22 = vld [vmem:[%s3783_s8 + $0x35] sm:$0xff] }
 0x188   : > { %v4288_v7 = vadd.f32 %v1665_v26, %v1425_v16  ;;  %3328 = vmatmul.msk.f32.vlgmr.msra.gmra.mxu1 %vm238_vm1, %v1752_v39  ;;  %3366 = vmatmul.msk.f32.vlgmr.msra.gmra.mxu2 %vm238_vm1, %v2062_v27  ;;  %v2684_v39 = vld [vmem:[%s3783_s8 + $0x36] sm:$0xff]  ;;  %v498_v16 = vadd.f32 %v4063_v6, %v3995_v37 }
 0x189   : > { %3404 = vmatmul.msk.f32.vlgmr.msra.gmra.mxu3 %vm238_vm1, %v2372_v50  ;;  %3442 = vmatmul.msk.f32.vlgmr.msra.gmra.mxu0 %vm238_vm1, %v2682_v25 }
 0x18b   : > { %v1048_v60 = vpop.f32.mrf.mxu2 }
 0x18c   : > { %v1116_v43 = vadd.f32 %v1048_v60, %v806_v61  ;;  %v1358_v62 = vpop.f32.mrf.mxu3 }
 0x18d   : > { %v741_v48 = vpop.f32.mrf.mxu1 }
 0x18e   : > { %v1426_v23 = vadd.f32 %v1358_v62, %v1116_v43  ;;  %v1671_v57 = vpop.f32.mrf.mxu0  ;;  %v807_v26 = vadd.f32 %v741_v48, %v497_v0  ;;  %v2065_v43 = vld [vmem:[%s3783_s8 + $0x3c] sm:$0xff] }
 0x18f   : > { %v2375_v48 = vld [vmem:[%s3783_s8 + $0x3d] sm:$0xff] }
 0x190   : > { %v4300_v9 = vadd.f32 %v1668_v33, %v1426_v23  ;;  %3329 = vmatmul.msk.f32.gmra.mxu1 %vm238_vm1, %v1753_v46  ;;  %3367 = vmatmul.msk.f32.gmra.mxu2 %vm238_vm1, %v2063_v54  ;;  %v2685_v46 = vld [vmem:[%s3783_s8 + $0x3e] sm:$0xff] }
 0x191   : > { %3405 = vmatmul.msk.f32.gmra.mxu3 %vm238_vm1, %v2373_v15  ;;  %3443 = vmatmul.msk.f32.gmra.mxu0 %vm238_vm1, %v2683_v32 }
 0x193   : > { %v1051_v5 = vpop.f32.mrf.mxu2 }
 0x194   : > { %v1117_v8 = vadd.f32 %v1051_v5, %v807_v26  ;;  %v1361_v13 = vpop.f32.mrf.mxu3  ;;  %v2066_v5 = vld [vmem:[%s3783_s8 + $0x44] sm:$0xff] }
 0x195   : > { %v744_v53 = vpop.f32.mrf.mxu1 }
 0x196   : > { %v1427_v40 = vadd.f32 %v1361_v13, %v1117_v8  ;;  %v1674_v30 = vpop.f32.mrf.mxu0  ;;  %v808_v33 = vadd.f32 %v744_v53, %v498_v16  ;;  %v2376_v13 = vld [vmem:[%s3783_s8 + $0x45] sm:$0xff] }
 0x197   : > { %v2686_v53 = vld [vmem:[%s3783_s8 + $0x46] sm:$0xff] }
 0x198   : > { %v4311_v50 = vadd.f32 %v1671_v57, %v1427_v40  ;;  %3330 = vmatmul.msk.f32.gmra.mxu1 %vm238_vm1, %v2062_v27  ;;  %3368 = vmatmul.msk.f32.gmra.mxu2 %vm238_vm1, %v2064_v19  ;;  %v499_v27 = vadd.f32 %v4063_v6, %v4010_v44 }
 0x199   : > { %3406 = vmatmul.msk.f32.gmra.mxu3 %vm238_vm1, %v2374_v22  ;;  %3444 = vmatmul.msk.f32.gmra.mxu0 %vm238_vm1, %v2684_v39 }
 0x19b   : > { %v1054_v25 = vpop.f32.mrf.mxu2 }
 0x19c   : > { %v1118_v34 = vadd.f32 %v1054_v25, %v808_v33  ;;  %v1364_v61 = vpop.f32.mrf.mxu3  ;;  %v2067_v25 = vld [vmem:[%s3783_s8 + $0x4c] sm:$0xff] }
 0x19d   : > { %v747_v60 = vpop.f32.mrf.mxu1 }
 0x19e   : > { %v1428_v62 = vadd.f32 %v1364_v61, %v1118_v34  ;;  %v1677_v37 = vpop.f32.mrf.mxu0  ;;  %v809_v15 = vadd.f32 %v747_v60, %v499_v27  ;;  %v2377_v61 = vld [vmem:[%s3783_s8 + $0x4d] sm:$0xff] }
 0x19f   : > { %v2687_v60 = vld [vmem:[%s3783_s8 + $0x4e] sm:$0xff] }
 0x1a0   : > { %v4322_v23 = vadd.f32 %v1674_v30, %v1428_v62  ;;  %3331 = vmatmul.msk.f32.gmra.mxu1 %vm238_vm1, %v2063_v54  ;;  %3369 = vmatmul.msk.f32.gmra.mxu2 %vm238_vm1, %v2065_v43  ;;  %v500_v54 = vadd.f32 %v4063_v6, %v4025_v51 }
 0x1a1   : > { %3407 = vmatmul.msk.f32.gmra.mxu3 %vm238_vm1, %v2375_v48  ;;  %3445 = vmatmul.msk.f32.gmra.mxu0 %vm238_vm1, %v2685_v46 }
 0x1a3   : > { %v1057_v57 = vpop.f32.mrf.mxu2 }
 0x1a4   : > { %v1119_v32 = vadd.f32 %v1057_v57, %v809_v15  ;;  %v1367_v0 = vpop.f32.mrf.mxu3  ;;  %v2068_v57 = vld [vmem:[%s3783_s8 + $0x54] sm:$0xff] }
 0x1a5   : > { %v750_v26 = vpop.f32.mrf.mxu1 }
 0x1a6   : > { %v1429_v8 = vadd.f32 %v1367_v0, %v1119_v32  ;;  %v1680_v44 = vpop.f32.mrf.mxu0  ;;  %v810_v22 = vadd.f32 %v750_v26, %v500_v54  ;;  %v2378_v0 = vld [vmem:[%s3783_s8 + $0x55] sm:$0xff] }
 0x1a7   : > { %v2688_v26 = vld [vmem:[%s3783_s8 + $0x56] sm:$0xff] }
 0x1a8   : > { %v4333_v40 = vadd.f32 %v1677_v37, %v1429_v8  ;;  %3332 = vmatmul.msk.f32.gmra.mxu1 %vm238_vm1, %v2064_v19  ;;  %3370 = vmatmul.msk.f32.gmra.mxu2 %vm238_vm1, %v2066_v5  ;;  %v501_v19 = vadd.f32 %v4063_v6, %v4040_v58 }
 0x1a9   : > { %3408 = vmatmul.msk.f32.gmra.mxu3 %vm238_vm1, %v2376_v13  ;;  %3446 = vmatmul.msk.f32.gmra.mxu0 %vm238_vm1, %v2686_v53 }
 0x1ab   : > { %v1060_v30 = vpop.f32.mrf.mxu2 }
 0x1ac   : > { %v1120_v39 = vadd.f32 %v1060_v30, %v810_v22  ;;  %v1370_v16 = vpop.f32.mrf.mxu3  ;;  %v2069_v30 = vld [vmem:[%s3783_s8 + $0x5c] sm:$0xff] }
 0x1ad   : > { %v753_v33 = vpop.f32.mrf.mxu1 }
 0x1ae   : > { %v1430_v34 = vadd.f32 %v1370_v16, %v1120_v39  ;;  %v1683_v51 = vpop.f32.mrf.mxu0  ;;  %v811_v48 = vadd.f32 %v753_v33, %v501_v19  ;;  %v2379_v16 = vld [vmem:[%s3783_s8 + $0x5d] sm:$0xff] }
 0x1af   : > { %v2689_v33 = vld [vmem:[%s3783_s8 + $0x5e] sm:$0xff] }
 0x1b0   : > { %v4344_v62 = vadd.f32 %v1680_v44, %v1430_v34  ;;  %3333 = vmatmul.msk.f32.gmra.mxu1 %vm238_vm1, %v2065_v43  ;;  %3371 = vmatmul.msk.f32.gmra.mxu2 %vm238_vm1, %v2067_v25  ;;  %v502_v43 = vadd.f32 %v4063_v6, %v4055_v1 }
 0x1b1   : > { %3409 = vmatmul.msk.f32.gmra.mxu3 %vm238_vm1, %v2377_v61  ;;  %3447 = vmatmul.msk.f32.gmra.mxu0 %vm238_vm1, %v2687_v60 }
 0x1b3   : > { %v1063_v37 = vpop.f32.mrf.mxu2 }
 0x1b4   : > { %v1121_v46 = vadd.f32 %v1063_v37, %v811_v48  ;;  %v1373_v27 = vpop.f32.mrf.mxu3  ;;  %v2070_v37 = vld [vmem:[%s3783_s8 + $0x64] sm:$0xff] }
 0x1b5   : > { %v756_v15 = vpop.f32.mrf.mxu1 }
 0x1b6   : > { %v1431_v32 = vadd.f32 %v1373_v27, %v1121_v46  ;;  %v1686_v58 = vpop.f32.mrf.mxu0  ;;  %v812_v13 = vadd.f32 %v756_v15, %v502_v43  ;;  %v2380_v27 = vld [vmem:[%s3783_s8 + $0x65] sm:$0xff] }
 0x1b7   : > { %v2690_v15 = vld [vmem:[%s3783_s8 + $0x66] sm:$0xff] }
 0x1b8   : > { %v4355_v8 = vadd.f32 %v1683_v51, %v1431_v32  ;;  %3334 = vmatmul.msk.f32.gmra.mxu1 %vm238_vm1, %v2066_v5  ;;  %3372 = vmatmul.msk.f32.gmra.mxu2 %vm238_vm1, %v2068_v57  ;;  %v503_v5 = vadd.f32 %v4063_v6, %v3937_v10 }
 0x1b9   : > { %3410 = vmatmul.msk.f32.gmra.mxu3 %vm238_vm1, %v2378_v0  ;;  %3448 = vmatmul.msk.f32.gmra.mxu0 %vm238_vm1, %v2688_v26 }
 0x1bb   : > { %v1066_v44 = vpop.f32.mrf.mxu2 }
 0x1bc   : > { %v1122_v53 = vadd.f32 %v1066_v44, %v812_v13  ;;  %v1376_v54 = vpop.f32.mrf.mxu3  ;;  %v2071_v44 = vld [vmem:[%s3783_s8 + $0x6c] sm:$0xff] }
 0x1bd   : > { %v759_v22 = vpop.f32.mrf.mxu1 }
 0x1be   : > { %v1432_v39 = vadd.f32 %v1376_v54, %v1122_v53  ;;  %v1689_v1 = vpop.f32.mrf.mxu0  ;;  %v813_v61 = vadd.f32 %v759_v22, %v503_v5  ;;  %v2381_v54 = vld [vmem:[%s3783_s8 + $0x6d] sm:$0xff] }
 0x1bf   : > { %v2691_v22 = vld [vmem:[%s3783_s8 + $0x6e] sm:$0xff] }
 0x1c0   : > { %v4366_v34 = vadd.f32 %v1686_v58, %v1432_v39  ;;  %3335 = vmatmul.msk.f32.gmra.mxu1 %vm238_vm1, %v2067_v25  ;;  %3373 = vmatmul.msk.f32.gmra.mxu2 %vm238_vm1, %v2069_v30  ;;  %v504_v25 = vadd.f32 %v4063_v6, %v3952_v17 }
 0x1c1   : > { %3411 = vmatmul.msk.f32.gmra.mxu3 %vm238_vm1, %v2379_v16  ;;  %3449 = vmatmul.msk.f32.gmra.mxu0 %vm238_vm1, %v2689_v33 }
 0x1c3   : > { %v1069_v51 = vpop.f32.mrf.mxu2 }
 0x1c4   : > { %v1123_v60 = vadd.f32 %v1069_v51, %v813_v61  ;;  %v1379_v19 = vpop.f32.mrf.mxu3  ;;  %v2072_v51 = vld [vmem:[%s3783_s8 + $0x74] sm:$0xff] }
 0x1c5   : > { %v762_v48 = vpop.f32.mrf.mxu1 }
 0x1c6   : > { %v1433_v46 = vadd.f32 %v1379_v19, %v1123_v60  ;;  %v1692_v10 = vpop.f32.mrf.mxu0  ;;  %v814_v0 = vadd.f32 %v762_v48, %v504_v25  ;;  %v2382_v19 = vld [vmem:[%s3783_s8 + $0x75] sm:$0xff] }
 0x1c7   : > { %v2692_v48 = vld [vmem:[%s3783_s8 + $0x76] sm:$0xff] }
 0x1c8   : > { %v4377_v32 = vadd.f32 %v1689_v1, %v1433_v46  ;;  %3336 = vmatmul.msk.f32.gmra.mxu1 %vm238_vm1, %v2068_v57  ;;  %3374 = vmatmul.msk.f32.gmra.mxu2 %vm238_vm1, %v2070_v37  ;;  %v505_v57 = vadd.f32 %v4063_v6, %v3967_v24 }
 0x1c9   : > { %3412 = vmatmul.msk.f32.gmra.mxu3 %vm238_vm1, %v2380_v27  ;;  %3450 = vmatmul.msk.f32.gmra.mxu0 %vm238_vm1, %v2690_v15 }
 0x1cb   : > { %v1072_v58 = vpop.f32.mrf.mxu2 }
 0x1cc   : > { %v1124_v26 = vadd.f32 %v1072_v58, %v814_v0  ;;  %v1382_v43 = vpop.f32.mrf.mxu3  ;;  %v2073_v58 = vld [vmem:[%s3783_s8 + $0x7c] sm:$0xff] }
 0x1cd   : > { %v765_v13 = vpop.f32.mrf.mxu1 }
 0x1ce   : > { %v1434_v53 = vadd.f32 %v1382_v43, %v1124_v26  ;;  %v1695_v17 = vpop.f32.mrf.mxu0  ;;  %v815_v16 = vadd.f32 %v765_v13, %v505_v57  ;;  %v2383_v43 = vld [vmem:[%s3783_s8 + $0x7d] sm:$0xff] }
 0x1cf   : > { %v2693_v13 = vld [vmem:[%s3783_s8 + $0x7e] sm:$0xff] }
 0x1d0   : > { %v4388_v39 = vadd.f32 %v1692_v10, %v1434_v53  ;;  %3337 = vmatmul.msk.f32.gmra.mxu1 %vm238_vm1, %v2069_v30  ;;  %3375 = vmatmul.msk.f32.gmra.mxu2 %vm238_vm1, %v2071_v44  ;;  %v506_v30 = vadd.f32 %v4063_v6, %v3982_v31 }
 0x1d1   : > { %3413 = vmatmul.msk.f32.gmra.mxu3 %vm238_vm1, %v2381_v54  ;;  %3451 = vmatmul.msk.f32.gmra.mxu0 %vm238_vm1, %v2691_v22 }
 0x1d3   : > { %v1075_v1 = vpop.f32.mrf.mxu2 }
 0x1d4   : > { %v1125_v33 = vadd.f32 %v1075_v1, %v815_v16  ;;  %v1385_v5 = vpop.f32.mrf.mxu3  ;;  %v2074_v1 = vld [vmem:[%s3783_s8 + $0x84] sm:$0xff] }
 0x1d5   : > { %v768_v61 = vpop.f32.mrf.mxu1 }
 0x1d6   : > { %v1435_v60 = vadd.f32 %v1385_v5, %v1125_v33  ;;  %v1698_v24 = vpop.f32.mrf.mxu0  ;;  %v816_v27 = vadd.f32 %v768_v61, %v506_v30  ;;  %v2384_v5 = vld [vmem:[%s3783_s8 + $0x85] sm:$0xff] }
 0x1d8   : > { %v4399_v46 = vadd.f32 %v1695_v17, %v1435_v60  ;;  %3338 = vmatmul.msk.f32.gmra.mxu1 %vm238_vm1, %v2070_v37  ;;  %3376 = vmatmul.msk.f32.gmra.mxu2 %vm238_vm1, %v2072_v51  ;;  %v507_v37 = vadd.f32 %v4063_v6, %v3997_v38  ;;  %v2694_v6 = vld [vmem:[%s3783_s8 + $0x86] sm:$0xff] }
 0x1d9   : > { %3414 = vmatmul.msk.f32.gmra.mxu3 %vm238_vm1, %v2382_v19  ;;  %3452 = vmatmul.msk.f32.gmra.mxu0 %vm238_vm1, %v2692_v48 }
 0x1db   : > { %v1078_v10 = vpop.f32.mrf.mxu2 }
 0x1dc   : > { %v1126_v15 = vadd.f32 %v1078_v10, %v816_v27  ;;  %v1388_v25 = vpop.f32.mrf.mxu3  ;;  %v2075_v10 = vld [vmem:[%s3783_s8 + $0x8c] sm:$0xff] }
 0x1dd   : > { %v771_v0 = vpop.f32.mrf.mxu1 }
 0x1de   : > { %v1436_v26 = vadd.f32 %v1388_v25, %v1126_v15  ;;  %v1701_v31 = vpop.f32.mrf.mxu0  ;;  %v817_v54 = vadd.f32 %v771_v0, %v507_v37  ;;  %v2385_v25 = vld [vmem:[%s3783_s8 + $0x8d] sm:$0xff] }
 0x1df   : > { %v2695_v0 = vld [vmem:[%s3783_s8 + $0x8e] sm:$0xff] }
 0x1e0   : > { %v4410_v53 = vadd.f32 %v1698_v24, %v1436_v26  ;;  %3339 = vmatmul.msk.f32.gmra.mxu1 %vm238_vm1, %v2071_v44  ;;  %3377 = vmatmul.msk.f32.gmra.mxu2 %vm238_vm1, %v2073_v58  ;;  %v3563_v44 = vld [vmem:[%s4726_s2] ss:$0 sm:$0xff] }
 0x1e1   : > { %3415 = vmatmul.msk.f32.gmra.mxu3 %vm238_vm1, %v2383_v43  ;;  %3453 = vmatmul.msk.f32.gmra.mxu0 %vm238_vm1, %v2693_v13  ;;  %v508_v61 = vadd.f32 %v3563_v44, %v4012_v45 }
 0x1e3   : > { %v1081_v17 = vpop.f32.mrf.mxu2 }
 0x1e4   : > { %v1127_v22 = vadd.f32 %v1081_v17, %v817_v54  ;;  %v1391_v57 = vpop.f32.mrf.mxu3  ;;  %v2076_v17 = vld [vmem:[%s3783_s8 + $0x94] sm:$0xff] }
 0x1e5   : > { %v774_v16 = vpop.f32.mrf.mxu1 }
 0x1e6   : > { %v1437_v33 = vadd.f32 %v1391_v57, %v1127_v22  ;;  %v1704_v38 = vpop.f32.mrf.mxu0  ;;  %v818_v19 = vadd.f32 %v774_v16, %v508_v61  ;;  %v2386_v57 = vld [vmem:[%s3783_s8 + $0x95] sm:$0xff] }
 0x1e7   : > { %v2696_v16 = vld [vmem:[%s3783_s8 + $0x96] sm:$0xff] }
 0x1e8   : > { %v4423_v60 = vadd.f32 %v1701_v31, %v1437_v33  ;;  %3340 = vmatmul.msk.f32.gmra.mxu1 %vm238_vm1, %v2072_v51  ;;  %3378 = vmatmul.msk.f32.gmra.mxu2 %vm238_vm1, %v2074_v1  ;;  %v509_v51 = vadd.f32 %v3563_v44, %v4027_v52 }
 0x1e9   : > { %3416 = vmatmul.msk.f32.gmra.mxu3 %vm238_vm1, %v2384_v5  ;;  %3454 = vmatmul.msk.f32.gmra.mxu0 %vm238_vm1, %v2694_v6 }
 0x1eb   : > { %v1084_v24 = vpop.f32.mrf.mxu2 }
 0x1ec   : > { %v1128_v48 = vadd.f32 %v1084_v24, %v818_v19  ;;  %v1394_v30 = vpop.f32.mrf.mxu3  ;;  %v2077_v24 = vld [vmem:[%s3783_s8 + $0x9c] sm:$0xff] }
 0x1ed   : > { %v777_v27 = vpop.f32.mrf.mxu1 }
 0x1ee   : > { %v1438_v15 = vadd.f32 %v1394_v30, %v1128_v48  ;;  %v1707_v45 = vpop.f32.mrf.mxu0  ;;  %v819_v43 = vadd.f32 %v777_v27, %v509_v51  ;;  %v2387_v30 = vld [vmem:[%s3783_s8 + $0x9d] sm:$0xff] }
 0x1ef   : > { %v2697_v27 = vld [vmem:[%s3783_s8 + $0x9e] sm:$0xff] }
 0x1f0   : > { %v4433_v26 = vadd.f32 %v1704_v38, %v1438_v15  ;;  %3341 = vmatmul.msk.f32.gmra.mxu1 %vm238_vm1, %v2073_v58  ;;  %3379 = vmatmul.msk.f32.gmra.mxu2 %vm238_vm1, %v2075_v10  ;;  %v510_v58 = vadd.f32 %v3563_v44, %v4042_v59 }
 0x1f1   : > { %3417 = vmatmul.msk.f32.gmra.mxu3 %vm238_vm1, %v2385_v25  ;;  %3455 = vmatmul.msk.f32.gmra.mxu0 %vm238_vm1, %v2695_v0 }
 0x1f3   : > { %v1087_v31 = vpop.f32.mrf.mxu2 }
 0x1f4   : > { %v1129_v13 = vadd.f32 %v1087_v31, %v819_v43  ;;  %v1397_v37 = vpop.f32.mrf.mxu3  ;;  %v2078_v31 = vld [vmem:[%s3783_s8 + $0xa4] sm:$0xff] }
 0x1f5   : > { %v780_v54 = vpop.f32.mrf.mxu1 }
 0x1f6   : > { %v1439_v22 = vadd.f32 %v1397_v37, %v1129_v13  ;;  %v1710_v52 = vpop.f32.mrf.mxu0  ;;  %v820_v5 = vadd.f32 %v780_v54, %v510_v58  ;;  %v2079_v58 = vld [vmem:[%s3783_s8 + $0xac] sm:$0xff] }
 0x1f8   : > { %v4443_v33 = vadd.f32 %v1707_v45, %v1439_v22  ;;  %3342 = vmatmul.msk.f32.gmra.mxu1 %vm238_vm1, %v2074_v1  ;;  %3380 = vmatmul.msk.f32.gmra.mxu2 %vm238_vm1, %v2076_v17  ;;  %v511_v1 = vadd.f32 %v3563_v44, %v4057_v2  ;;  %v2388_v2 = vld [vmem:[%s3783_s8 + $0xa5] sm:$0xff] }
 0x1f9   : > { %3418 = vmatmul.msk.f32.gmra.mxu3 %vm238_vm1, %v2386_v57  ;;  %3456 = vmatmul.msk.f32.gmra.mxu0 %vm238_vm1, %v2696_v16 }
 0x1fb   : > { %v1090_v38 = vpop.f32.mrf.mxu2 }
 0x1fc   : > { %v1130_v6 = vadd.f32 %v1090_v38, %v820_v5  ;;  %v1400_v61 = vpop.f32.mrf.mxu3  ;;  %v2389_v38 = vld [vmem:[%s3783_s8 + $0xad] sm:$0xff] }
 0x1fd   : > { %v783_v19 = vpop.f32.mrf.mxu1 }
 0x1fe   : > { %v1440_v48 = vadd.f32 %v1400_v61, %v1130_v6  ;;  %v1713_v59 = vpop.f32.mrf.mxu0  ;;  %v821_v25 = vadd.f32 %v783_v19, %v511_v1  ;;  %v2699_v6 = vld [vmem:[%s3783_s8 + $0xae] sm:$0xff] }
 0x1ff   : > { %v2390_v1 = vld [vmem:[%s3783_s8 + $0xb5] sm:$0xff] }
 0x200   : > { %v4453_v15 = vadd.f32 %v1710_v52, %v1440_v48  ;;  %3343 = vmatmul.msk.f32.gmra.mxu1 %vm238_vm1, %v2075_v10  ;;  %3381 = vmatmul.msk.f32.gmra.mxu2 %vm238_vm1, %v2077_v24  ;;  %v2698_v10 = vld [vmem:[%s3783_s8 + $0xa6] sm:$0xff] }
 0x201   : > { %3419 = vmatmul.msk.f32.gmra.mxu3 %vm238_vm1, %v2387_v30  ;;  %3457 = vmatmul.msk.f32.gmra.mxu0 %vm238_vm1, %v2697_v27  ;;  %v2080_v27 = vld [vmem:[%s3783_s8 + $0xb4] sm:$0xff] }
 0x203   : > { %v1093_v45 = vpop.f32.mrf.mxu2 }
 0x204   : > { %v1131_v0 = vadd.f32 %v1093_v45, %v821_v25  ;;  %v1403_v51 = vpop.f32.mrf.mxu3  ;;  %v2700_v45 = vld [vmem:[%s3783_s8 + $0xb6] sm:$0xff] }
 0x205   : > { %v1918_v43 = vpop.f32.mrf.mxu1 }
 0x206   : > { %v1441_v13 = vadd.f32 %v1403_v51, %v1131_v0  ;;  %v2848_v44 = vpop.f32.mrf.mxu0  ;;  %v2026_v54 = vadd.f32 %v1918_v43, %v4078_v41 }
 0x208   : > { %v4462_v37 = vadd.f32 %v1713_v59, %v1441_v13  ;;  %3344 = vmatmul.msk.f32.gmra.mxu1 %vm238_vm1, %v2076_v17  ;;  %3382 = vmatmul.msk.f32.gmra.mxu2 %vm238_vm1, %v2078_v31 }
 0x209   : > { %3420 = vmatmul.msk.f32.gmra.mxu3 %vm238_vm1, %v2388_v2  ;;  %3458 = vmatmul.msk.f32.gmra.mxu0 %vm238_vm1, %v2698_v10 }
 0x20b   : > { %v2228_v22 = vpop.f32.mrf.mxu2 }
 0x20c   : > { %v2336_v57 = vadd.f32 %v2228_v22, %v2026_v54  ;;  %v2538_v52 = vpop.f32.mrf.mxu3  ;;  %v2391_v54 = vld [vmem:[%s3783_s8 + $0xbd] sm:$0xff] }
 0x20d   : > { %v1921_v16 = vpop.f32.mrf.mxu1  ;;  %v2701_v22 = vld [vmem:[%s3783_s8 + $0xbe] sm:$0xff] }
 0x20e   : > { %v2646_v5 = vadd.f32 %v2538_v52, %v2336_v57  ;;  %v2851_v17 = vpop.f32.mrf.mxu0  ;;  %v2027_v41 = vadd.f32 %v1921_v16, %v4089_v3 }
 0x210   : > { %v2956_v61 = vadd.f32 %v2848_v44, %v2646_v5  ;;  %3345 = vmatmul.msk.f32.gmra.mxu1 %vm238_vm1, %v2077_v24  ;;  %3383 = vmatmul.msk.f32.gmra.mxu2 %vm238_vm1, %v2079_v58  ;;  %v2081_v44 = vld [vmem:[%s3783_s8 + $0xbc] sm:$0xff] }
 0x211   : > { %3421 = vmatmul.msk.f32.gmra.mxu3 %vm238_vm1, %v2389_v38  ;;  %3459 = vmatmul.msk.f32.gmra.mxu0 %vm238_vm1, %v2699_v6 }
 0x212   : > { %2992 = vst [vmem:[%s4480_s10] sm:$0xff] %v2956_v61  ;;  %v2392_v61 = vld [vmem:[%s3783_s8 + $0xc5] sm:$0xff] }
 0x213   : > { %v2231_v19 = vpop.f32.mrf.mxu2 }
 0x214   : > { %v2337_v48 = vadd.f32 %v2231_v19, %v2027_v41  ;;  %v2541_v30 = vpop.f32.mrf.mxu3  ;;  %v2702_v41 = vld [vmem:[%s3783_s8 + $0xc6] sm:$0xff] }
 0x215   : > { %v1924_v59 = vpop.f32.mrf.mxu1 }
 0x216   : > { %v2647_v24 = vadd.f32 %v2541_v30, %v2337_v48  ;;  %v2854_v25 = vpop.f32.mrf.mxu0  ;;  %v2028_v3 = vadd.f32 %v1924_v59, %v4100_v29 }
 0x218   : > { %v2957_v0 = vadd.f32 %v2851_v17, %v2647_v24  ;;  %3346 = vmatmul.msk.f32.gmra.mxu1 %vm238_vm1, %v2078_v31  ;;  %3384 = vmatmul.msk.f32.gmra.mxu2 %vm238_vm1, %v2080_v27  ;;  %v2082_v17 = vld [vmem:[%s3783_s8 + $0xc4] sm:$0xff] }
 0x219   : > { %3422 = vmatmul.msk.f32.gmra.mxu3 %vm238_vm1, %v2390_v1  ;;  %3460 = vmatmul.msk.f32.gmra.mxu0 %vm238_vm1, %v2700_v45  ;;  %v2083_v1 = vld [vmem:[%s3783_s8 + $0xcc] sm:$0xff] }
 0x21a   : > { %2993 = vst [vmem:[%s4480_s10 + $0x8] sm:$0xff] %v2957_v0  ;;  %v2393_v45 = vld [vmem:[%s3783_s8 + $0xcd] sm:$0xff] }
 0x21b   : > { %v2234_v51 = vpop.f32.mrf.mxu2  ;;  %v2703_v0 = vld [vmem:[%s3783_s8 + $0xce] sm:$0xff] }
 0x21c   : > { %v2338_v43 = vadd.f32 %v2234_v51, %v2028_v3  ;;  %v2544_v13 = vpop.f32.mrf.mxu3 }
 0x21d   : > { %v1927_v2 = vpop.f32.mrf.mxu1 }
 0x21e   : > { %v2648_v10 = vadd.f32 %v2544_v13, %v2338_v43  ;;  %v2857_v31 = vpop.f32.mrf.mxu0  ;;  %v2029_v29 = vadd.f32 %v1927_v2, %v4111_v55 }
 0x220   : > { %v2958_v57 = vadd.f32 %v2854_v25, %v2648_v10  ;;  %3347 = vmatmul.msk.f32.gmra.mxu1 %vm238_vm1, %v2079_v58  ;;  %3385 = vmatmul.msk.f32.gmra.mxu2 %vm238_vm1, %v2081_v44  ;;  %v2084_v10 = vld [vmem:[%s3783_s8 + $0xd4] sm:$0xff] }
 0x221   : > { %3423 = vmatmul.msk.f32.gmra.mxu3 %vm238_vm1, %v2391_v54  ;;  %3461 = vmatmul.msk.f32.gmra.mxu0 %vm238_vm1, %v2701_v22  ;;  %v2704_v22 = vld [vmem:[%s3783_s8 + $0xd6] sm:$0xff] }
 0x222   : > { %2994 = vst [vmem:[%s4480_s10 + $0x10] sm:$0xff] %v2958_v57 }
 0x223   : > { %v2237_v52 = vpop.f32.mrf.mxu2 }
 0x224   : > { %v2339_v16 = vadd.f32 %v2237_v52, %v2029_v29  ;;  %v2547_v5 = vpop.f32.mrf.mxu3 }
 0x225   : > { %v1930_v38 = vpop.f32.mrf.mxu1 }
 0x226   : > { %v2649_v6 = vadd.f32 %v2547_v5, %v2339_v16  ;;  %v2860_v58 = vpop.f32.mrf.mxu0  ;;  %v2030_v55 = vadd.f32 %v1930_v38, %v4122_v20  ;;  %v2085_v38 = vld [vmem:[%s3783_s8 + $0xdc] sm:$0xff] }
 0x228   : > { %v2959_v19 = vadd.f32 %v2857_v31, %v2649_v6  ;;  %3348 = vmatmul.msk.f32.gmra.mxu1 %vm238_vm1, %v2080_v27  ;;  %3386 = vmatmul.msk.f32.gmra.mxu2 %vm238_vm1, %v2082_v17  ;;  %v2394_v31 = vld [vmem:[%s3783_s8 + $0xd5] sm:$0xff] }
 0x229   : > { %3424 = vmatmul.msk.f32.gmra.mxu3 %vm238_vm1, %v2392_v61  ;;  %3462 = vmatmul.msk.f32.gmra.mxu0 %vm238_vm1, %v2702_v41  ;;  %v2395_v61 = vld [vmem:[%s3783_s8 + $0xdd] sm:$0xff] }
 0x22a   : > { %2995 = vst [vmem:[%s4480_s10 + $0x18] sm:$0xff] %v2959_v19 }
 0x22b   : > { %v2240_v48 = vpop.f32.mrf.mxu2 }
 0x22c   : > { %v2340_v30 = vadd.f32 %v2240_v48, %v2030_v55  ;;  %v2550_v59 = vpop.f32.mrf.mxu3 }
 0x22d   : > { %v1933_v24 = vpop.f32.mrf.mxu1 }
 0x22e   : > { %v2650_v25 = vadd.f32 %v2550_v59, %v2340_v30  ;;  %v2863_v27 = vpop.f32.mrf.mxu0  ;;  %v2031_v20 = vadd.f32 %v1933_v24, %v4133_v47  ;;  %v2086_v59 = vld [vmem:[%s3783_s8 + $0xe4] sm:$0xff] }
 0x230   : > { %v2960_v3 = vadd.f32 %v2860_v58, %v2650_v25  ;;  %3349 = vmatmul.msk.f32.gmra.mxu1 %vm238_vm1, %v2081_v44  ;;  %3387 = vmatmul.msk.f32.gmra.mxu2 %vm238_vm1, %v2083_v1  ;;  %v2705_v58 = vld [vmem:[%s3783_s8 + $0xde] sm:$0xff] }
 0x231   : > { %3425 = vmatmul.msk.f32.gmra.mxu3 %vm238_vm1, %v2393_v45  ;;  %3463 = vmatmul.msk.f32.gmra.mxu0 %vm238_vm1, %v2703_v0  ;;  %v2396_v25 = vld [vmem:[%s3783_s8 + $0xe5] sm:$0xff] }
 0x232   : > { %2996 = vst [vmem:[%s4480_s10 + $0x20] sm:$0xff] %v2960_v3  ;;  %v2706_v45 = vld [vmem:[%s3783_s8 + $0xe6] sm:$0xff] }
 0x233   : > { %v2243_v51 = vpop.f32.mrf.mxu2 }
 0x234   : > { %v2341_v43 = vadd.f32 %v2243_v51, %v2031_v20  ;;  %v2553_v13 = vpop.f32.mrf.mxu3 }
 0x235   : > { %v1936_v2 = vpop.f32.mrf.mxu1 }
 0x236   : > { %v2651_v54 = vadd.f32 %v2553_v13, %v2341_v43  ;;  %v2866_v44 = vpop.f32.mrf.mxu0  ;;  %v2032_v47 = vadd.f32 %v1936_v2, %v4144_v12  ;;  %v2087_v43 = vld [vmem:[%s3783_s8 + $0xec] sm:$0xff] }
 0x237   : > { %v2397_v2 = vld [vmem:[%s3783_s8 + $0xed] sm:$0xff] }
 0x238   : > { %v2961_v57 = vadd.f32 %v2863_v27, %v2651_v54  ;;  %3350 = vmatmul.msk.f32.gmra.mxu1 %vm238_vm1, %v2082_v17  ;;  %3388 = vmatmul.msk.f32.gmra.mxu2 %vm238_vm1, %v2084_v10  ;;  %v2707_v54 = vld [vmem:[%s3783_s8 + $0xee] sm:$0xff] }
 0x239   : > { %3426 = vmatmul.msk.f32.gmra.mxu3 %vm238_vm1, %v2394_v31  ;;  %3464 = vmatmul.msk.f32.gmra.mxu0 %vm238_vm1, %v2704_v22 }
 0x23a   : > { %2997 = vst [vmem:[%s4480_s10 + $0x28] sm:$0xff] %v2961_v57 }
 0x23b   : > { %v2246_v29 = vpop.f32.mrf.mxu2 }
 0x23c   : > { %v2342_v52 = vadd.f32 %v2246_v29, %v2032_v47  ;;  %v2556_v16 = vpop.f32.mrf.mxu3  ;;  %v2088_v29 = vld [vmem:[%s3783_s8 + $0xf4] sm:$0xff] }
 0x23d   : > { %v1939_v5 = vpop.f32.mrf.mxu1 }
 0x23e   : > { %v2652_v6 = vadd.f32 %v2556_v16, %v2342_v52  ;;  %v2869_v17 = vpop.f32.mrf.mxu0  ;;  %v2033_v12 = vadd.f32 %v1939_v5, %v4155_v36  ;;  %v2398_v16 = vld [vmem:[%s3783_s8 + $0xf5] sm:$0xff] }
 0x240   : > { %v2962_v41 = vadd.f32 %v2866_v44, %v2652_v6  ;;  %3351 = vmatmul.msk.f32.gmra.mxu1 %vm238_vm1, %v2083_v1  ;;  %3389 = vmatmul.msk.f32.gmra.mxu2 %vm238_vm1, %v2085_v38 }
 0x241   : > { %3427 = vmatmul.msk.f32.gmra.mxu3 %vm238_vm1, %v2395_v61  ;;  %3465 = vmatmul.msk.f32.gmra.mxu0 %vm238_vm1, %v2705_v58 }
 0x242   : > { %2998 = vst [vmem:[%s4480_s10 + $0x30] sm:$0xff] %v2962_v41 }
 0x243   : > { %v2249_v19 = vpop.f32.mrf.mxu2 }
 0x244   : > { %v2343_v55 = vadd.f32 %v2249_v19, %v2033_v12  ;;  %v2559_v48 = vpop.f32.mrf.mxu3  ;;  %v2089_v12 = vld [vmem:[%s3783_s8 + $0xfc] sm:$0xff] }
 0x245   : > { %v1942_v30 = vpop.f32.mrf.mxu1 }
 0x246   : > { %v2653_v24 = vadd.f32 %v2559_v48, %v2343_v55  ;;  %v2872_v1 = vpop.f32.mrf.mxu0  ;;  %v2034_v36 = vadd.f32 %v1942_v30, %v4166_v14  ;;  %v2399_v55 = vld [vmem:[%s3783_s8 + $0xfd] sm:$0xff] }
 0x247   : > { %v2709_v30 = vld [vmem:[%s3783_s8 + $0xfe] sm:$0xff] }
 0x248   : > { %v2963_v27 = vadd.f32 %v2869_v17, %v2653_v24  ;;  %3352 = vmatmul.msk.f32.gmra.mxu1 %vm238_vm1, %v2084_v10  ;;  %3390 = vmatmul.msk.f32.gmra.mxu2 %vm238_vm1, %v2086_v59 }
 0x249   : > { %3428 = vmatmul.msk.f32.gmra.mxu3 %vm238_vm1, %v2396_v25  ;;  %3466 = vmatmul.msk.f32.gmra.mxu0 %vm238_vm1, %v2706_v45 }
 0x24a   : > { %2999 = vst [vmem:[%s4480_s10 + $0x38] sm:$0xff] %v2963_v27  ;;  %v2090_v27 = vld [vmem:[%s3783_s8 + $0x104] sm:$0xff] }
 0x24b   : > { %v2252_v0 = vpop.f32.mrf.mxu2 }
 0x24c   : > { %v2344_v3 = vadd.f32 %v2252_v0, %v2034_v36  ;;  %v2562_v20 = vpop.f32.mrf.mxu3  ;;  %v2400_v0 = vld [vmem:[%s3783_s8 + $0x105] sm:$0xff] }
 0x24d   : > { %v1945_v51 = vpop.f32.mrf.mxu1 }
 0x24e   : > { %v2654_v13 = vadd.f32 %v2562_v20, %v2344_v3  ;;  %v2875_v10 = vpop.f32.mrf.mxu0  ;;  %v2035_v14 = vadd.f32 %v1945_v51, %v4177_v21  ;;  %v2710_v20 = vld [vmem:[%s3783_s8 + $0x106] sm:$0xff] }
 0x250   : > { %v2964_v31 = vadd.f32 %v2872_v1, %v2654_v13  ;;  %3353 = vmatmul.msk.f32.gmra.mxu1 %vm238_vm1, %v2085_v38  ;;  %3391 = vmatmul.msk.f32.gmra.mxu2 %vm238_vm1, %v2087_v43  ;;  %v2708_v38 = vld [vmem:[%s3783_s8 + $0xf6] sm:$0xff] }
 0x251   : > { %3429 = vmatmul.msk.f32.gmra.mxu3 %vm238_vm1, %v2397_v2  ;;  %3467 = vmatmul.msk.f32.gmra.mxu0 %vm238_vm1, %v2707_v54  ;;  %v2091_v54 = vld [vmem:[%s3783_s8 + $0x10c] sm:$0xff] }
 0x252   : > { %3000 = vst [vmem:[%s4480_s10 + $0x40] sm:$0xff] %v2964_v31 }
 0x253   : > { %v2255_v44 = vpop.f32.mrf.mxu2 }
 0x254   : > { %v2345_v22 = vadd.f32 %v2255_v44, %v2035_v14  ;;  %v2565_v57 = vpop.f32.mrf.mxu3  ;;  %v2401_v14 = vld [vmem:[%s3783_s8 + $0x10d] sm:$0xff] }
 0x255   : > { %v1948_v47 = vpop.f32.mrf.mxu1 }
 0x256   : > { %v2655_v52 = vadd.f32 %v2565_v57, %v2345_v22  ;;  %v2878_v5 = vpop.f32.mrf.mxu0  ;;  %v2036_v21 = vadd.f32 %v1948_v47, %v4188_v28  ;;  %v2711_v22 = vld [vmem:[%s3783_s8 + $0x10e] sm:$0xff] }
 0x258   : > { %v2965_v6 = vadd.f32 %v2875_v10, %v2655_v52  ;;  %3354 = vmatmul.msk.f32.gmra.mxu1 %vm238_vm1, %v2086_v59  ;;  %3392 = vmatmul.msk.f32.gmra.mxu2 %vm238_vm1, %v2088_v29 }
 0x259   : > { %3430 = vmatmul.msk.f32.gmra.mxu3 %vm238_vm1, %v2398_v16  ;;  %3468 = vmatmul.msk.f32.gmra.mxu0 %vm238_vm1, %v2708_v38 }
 0x25a   : > { %3001 = vst [vmem:[%s4480_s10 + $0x48] sm:$0xff] %v2965_v6  ;;  %v2402_v6 = vld [vmem:[%s3783_s8 + $0x115] sm:$0xff] }
 0x25b   : > { %v2258_v61 = vpop.f32.mrf.mxu2 }
 0x25c   : > { %v2346_v17 = vadd.f32 %v2258_v61, %v2036_v21  ;;  %v2568_v58 = vpop.f32.mrf.mxu3  ;;  %v2712_v61 = vld [vmem:[%s3783_s8 + $0x116] sm:$0xff] }
 0x25d   : > { %v1951_v41 = vpop.f32.mrf.mxu1 }
 0x25e   : > { %v2656_v19 = vadd.f32 %v2568_v58, %v2346_v17  ;;  %v2881_v48 = vpop.f32.mrf.mxu0  ;;  %v2037_v28 = vadd.f32 %v1951_v41, %v4199_v35 }
 0x260   : > { %v2966_v59 = vadd.f32 %v2878_v5, %v2656_v19  ;;  %3355 = vmatmul.msk.f32.gmra.mxu1 %vm238_vm1, %v2087_v43  ;;  %3393 = vmatmul.msk.f32.gmra.mxu2 %vm238_vm1, %v2089_v12  ;;  %v2092_v5 = vld [vmem:[%s3783_s8 + $0x114] sm:$0xff] }
 0x261   : > { %3431 = vmatmul.msk.f32.gmra.mxu3 %vm238_vm1, %v2399_v55  ;;  %3469 = vmatmul.msk.f32.gmra.mxu0 %vm238_vm1, %v2709_v30  ;;  %v2093_v55 = vld [vmem:[%s3783_s8 + $0x11c] sm:$0xff] }
 0x262   : > { %3002 = vst [vmem:[%s4480_s10 + $0x50] sm:$0xff] %v2966_v59  ;;  %v2403_v30 = vld [vmem:[%s3783_s8 + $0x11d] sm:$0xff] }
 0x263   : > { %v2261_v24 = vpop.f32.mrf.mxu2 }
 0x264   : > { %v2347_v25 = vadd.f32 %v2261_v24, %v2037_v28  ;;  %v2571_v1 = vpop.f32.mrf.mxu3  ;;  %v2713_v28 = vld [vmem:[%s3783_s8 + $0x11e] sm:$0xff] }
 0x265   : > { %v1954_v45 = vpop.f32.mrf.mxu1 }
 0x266   : > { %v2657_v36 = vadd.f32 %v2571_v1, %v2347_v25  ;;  %v2884_v3 = vpop.f32.mrf.mxu0  ;;  %v2038_v35 = vadd.f32 %v1954_v45, %v4210_v42 }
 0x268   : > { %v2967_v51 = vadd.f32 %v2881_v48, %v2657_v36  ;;  %3356 = vmatmul.msk.f32.gmra.mxu1 %vm238_vm1, %v2088_v29  ;;  %3394 = vmatmul.msk.f32.gmra.mxu2 %vm238_vm1, %v2090_v27  ;;  %v2094_v36 = vld [vmem:[%s3783_s8 + $0x124] sm:$0xff] }
 0x269   : > { %3432 = vmatmul.msk.f32.gmra.mxu3 %vm238_vm1, %v2400_v0  ;;  %3470 = vmatmul.msk.f32.gmra.mxu0 %vm238_vm1, %v2710_v20 }
 0x26a   : > { %3003 = vst [vmem:[%s4480_s10 + $0x58] sm:$0xff] %v2967_v51  ;;  %v2714_v51 = vld [vmem:[%s3783_s8 + $0x126] sm:$0xff] }
 0x26b   : > { %v2264_v43 = vpop.f32.mrf.mxu2 }
 0x26c   : > { %v2348_v13 = vadd.f32 %v2264_v43, %v2038_v35  ;;  %v2574_v2 = vpop.f32.mrf.mxu3 }
 0x26d   : > { %v1957_v10 = vpop.f32.mrf.mxu1 }
 0x26e   : > { %v2658_v31 = vadd.f32 %v2574_v2, %v2348_v13  ;;  %v2887_v44 = vpop.f32.mrf.mxu0  ;;  %v2039_v42 = vadd.f32 %v1957_v10, %v4221_v49 }
 0x270   : > { %v2968_v57 = vadd.f32 %v2884_v3, %v2658_v31  ;;  %3357 = vmatmul.msk.f32.gmra.mxu1 %vm238_vm1, %v2089_v12  ;;  %3395 = vmatmul.msk.f32.gmra.mxu2 %vm238_vm1, %v2091_v54  ;;  %v2404_v3 = vld [vmem:[%s3783_s8 + $0x125] sm:$0xff] }
 0x271   : > { %3433 = vmatmul.msk.f32.gmra.mxu3 %vm238_vm1, %v2401_v14  ;;  %3471 = vmatmul.msk.f32.gmra.mxu0 %vm238_vm1, %v2711_v22  ;;  %v2405_v14 = vld [vmem:[%s3783_s8 + $0x12d] sm:$0xff] }
 0x272   : > { %3004 = vst [vmem:[%s4480_s10 + $0x60] sm:$0xff] %v2968_v57  ;;  %v2715_v22 = vld [vmem:[%s3783_s8 + $0x12e] sm:$0xff] }
 0x273   : > { %v2267_v47 = vpop.f32.mrf.mxu2 }
 0x274   : > { %v2349_v29 = vadd.f32 %v2267_v47, %v2039_v42  ;;  %v2577_v52 = vpop.f32.mrf.mxu3 }
 0x275   : > { %v1960_v16 = vpop.f32.mrf.mxu1 }
 0x276   : > { %v2659_v38 = vadd.f32 %v2577_v52, %v2349_v29  ;;  %v2890_v21 = vpop.f32.mrf.mxu0  ;;  %v2040_v49 = vadd.f32 %v1960_v16, %v4232_v56  ;;  %v2096_v16 = vld [vmem:[%s3783_s8 + $0x134] sm:$0xff] }
 0x278   : > { %v2969_v17 = vadd.f32 %v2887_v44, %v2659_v38  ;;  %3358 = vmatmul.msk.f32.gmra.mxu1 %vm238_vm1, %v2090_v27  ;;  %3396 = vmatmul.msk.f32.gmra.mxu2 %vm238_vm1, %v2092_v5  ;;  %v2406_v38 = vld [vmem:[%s3783_s8 + $0x135] sm:$0xff] }
 0x279   : > { %3434 = vmatmul.msk.f32.gmra.mxu3 %vm238_vm1, %v2402_v6  ;;  %3472 = vmatmul.msk.f32.gmra.mxu0 %vm238_vm1, %v2712_v61 }
 0x27a   : > { %3005 = vst [vmem:[%s4480_s10 + $0x68] sm:$0xff] %v2969_v17 }
 0x27b   : > { %v2270_v58 = vpop.f32.mrf.mxu2 }
 0x27c   : > { %v2350_v41 = vadd.f32 %v2270_v58, %v2040_v49  ;;  %v2580_v12 = vpop.f32.mrf.mxu3 }
 0x27d   : > { %v1963_v19 = vpop.f32.mrf.mxu1 }
 0x27e   : > { %v2660_v48 = vadd.f32 %v2580_v12, %v2350_v41  ;;  %v2893_v59 = vpop.f32.mrf.mxu0  ;;  %v2041_v56 = vadd.f32 %v1963_v19, %v4243_v63  ;;  %v2097_v12 = vld [vmem:[%s3783_s8 + $0x13c] sm:$0xff] }
 0x280   : > { %v2970_v24 = vadd.f32 %v2890_v21, %v2660_v48  ;;  %3359 = vmatmul.msk.f32.gmra.mxu1 %vm238_vm1, %v2091_v54  ;;  %3397 = vmatmul.msk.f32.gmra.mxu2 %vm238_vm1, %v2093_v55  ;;  %v2095_v54 = vld [vmem:[%s3783_s8 + $0x12c] sm:$0xff]  ;;  %v2716_v21 = vld [vmem:[%s3783_s8 + $0x136] sm:$0xff] }
 0x281   : > { %3435 = vmatmul.msk.f32.gmra.mxu3 %vm238_vm1, %v2403_v30  ;;  %3473 = vmatmul.msk.f32.gmra.mxu0 %vm238_vm1, %v2713_v28  ;;  %v2717_v30 = vld [vmem:[%s3783_s8 + $0x13e] sm:$0xff] }
 0x282   : > { %3006 = vst [vmem:[%s4480_s10 + $0x70] sm:$0xff] %v2970_v24 }
 0x283   : > { %v2273_v25 = vpop.f32.mrf.mxu2 }
 0x284   : > { %v2351_v1 = vadd.f32 %v2273_v25, %v2041_v56  ;;  %v2583_v45 = vpop.f32.mrf.mxu3 }
 0x285   : > { %v1966_v27 = vpop.f32.mrf.mxu1 }
 0x286   : > { %v2661_v0 = vadd.f32 %v2583_v45, %v2351_v1  ;;  %v2896_v20 = vpop.f32.mrf.mxu0  ;;  %v2042_v63 = vadd.f32 %v1966_v27, %v4254_v4 }
 0x288   : > { %v2971_v35 = vadd.f32 %v2893_v59, %v2661_v0  ;;  %3360 = vmatmul.msk.f32.gmra.mxu1 %vm238_vm1, %v2092_v5  ;;  %3398 = vmatmul.msk.f32.gmra.mxu2 %vm238_vm1, %v2094_v36 }
 0x289   : > { %3436 = vmatmul.msk.f32.gmra.mxu3 %vm238_vm1, %v2404_v3  ;;  %3474 = vmatmul.msk.f32.gmra.mxu0 %vm238_vm1, %v2714_v51 }
 0x28a   : > { %3007 = vst [vmem:[%s4480_s10 + $0x78] sm:$0xff] %v2971_v35 }
 0x28b   : > { %v2276_v43 = vpop.f32.mrf.mxu2 }
 0x28c   : > { %v2352_v13 = vadd.f32 %v2276_v43, %v2042_v63  ;;  %v2586_v2 = vpop.f32.mrf.mxu3 }
 0x28d   : > { %v1969_v10 = vpop.f32.mrf.mxu1 }
 0x28e   : > { %v2662_v31 = vadd.f32 %v2586_v2, %v2352_v13  ;;  %v2899_v44 = vpop.f32.mrf.mxu0  ;;  %v2043_v4 = vadd.f32 %v1969_v10, %v4265_v11 }
 0x290   : > { %v2972_v57 = vadd.f32 %v2896_v20, %v2662_v31  ;;  %3361 = vmatmul.msk.f32.gmra.mxu1 %vm238_vm1, %v2093_v55  ;;  %3399 = vmatmul.msk.f32.gmra.mxu2 %vm238_vm1, %v2095_v54  ;;  %v2407_v55 = vld [vmem:[%s3783_s8 + $0x13d] sm:$0xff]  ;;  %s3487_s8 = smul.u32 36, %s3642_s15 }
 0x291   : > { %3437 = vmatmul.msk.f32.gmra.mxu3 %vm238_vm1, %v2405_v14  ;;  %3475 = vmatmul.msk.f32.gmra.mxu0 %vm238_vm1, %v2715_v22 }
 0x292   : > { %3008 = vst [vmem:[%s4480_s10 + $0x80] sm:$0xff] %v2972_v57  ;;  %s3040_s20 = sadd.s32 %s3488_s11, %s3487_s8  ;;  %s3584_s8 = scalar_lea.hbm %s4727_s3, 4608 }
 0x293   : > { %v2279_v42 = vpop.f32.mrf.mxu2  ;;  %s3478_s21 = sshll.u32 %s3040_s20, 3 }
 0x294   : > { %v2353_v47 = vadd.f32 %v2279_v42, %v2043_v4  ;;  %v2589_v29 = vpop.f32.mrf.mxu3  ;;  %s3042_s24 = scalar_lea.hbm %s4727_s3, %s3478_s21 }
 0x295   : > { %v1972_v52 = vpop.f32.mrf.mxu1  ;;  %s3045_s28 = sshll.u32 %s3042_s24, 4  ;;  %s3046_s28 = int_to_ptr.hbm [resolvable:$true] %s3045_s28 }
 0x296   : > { %v2663_v5 = vadd.f32 %v2589_v29, %v2353_v47  ;;  %v2902_v6 = vpop.f32.mrf.mxu0  ;;  %v2044_v11 = vadd.f32 %v1972_v52, %v4276_v18  ;;  %s3578_s4 = sshra.s32 %s3046_s28, 4  ;;  %s3579_s4 = int_to_ptr.hbm [resolvable:$true] %s3578_s4 }
 0x297   : > { %s3580_s5 = scalar_lea.hbm %s3579_s4, 288  ;;  %p3585_p4 = scmp.lt.s32.totalorder %s3579_s4, %s4727_s3 }
 0x298   : > { %v2973_v61 = vadd.f32 %v2899_v44, %v2663_v5  ;;  %3362 = vmatmul.msk.f32.gmra.mxu1 %vm238_vm1, %v2094_v36  ;;  %3400 = vmatmul.msk.f32.gmra.mxu2 %vm238_vm1, %v2096_v16  ;;  %p3581_p0 = scmp.ne.s32.totalorder %s3579_s4, %s3580_s5  ;;  %p3586_p5 = scmp.lt.s32.totalorder %s3584_s8, %s3580_s5 }
 0x299   : > { %3438 = vmatmul.msk.f32.gmra.mxu3 %vm238_vm1, %v2406_v38  ;;  %3476 = vmatmul.msk.f32.gmra.mxu0 %vm238_vm1, %v2716_v21 }
 0x29a   : > { %3009 = vst [vmem:[%s4480_s10 + $0x88] sm:$0xff] %v2973_v61  ;;  %p3582_p1 = pnand %p3581_p0, %p3733_p3  ;;  %p3587_p6 = por %p3586_p5, %p3585_p4 }
 0x29b   : > { %v2282_v17 = vpop.f32.mrf.mxu2 }
 0x29c   : > { %v2354_v49 = vadd.f32 %v2282_v17, %v2044_v11  ;;  %v2592_v58 = vpop.f32.mrf.mxu3  ;;  %p3583_p2 = pneg %p3582_p1 }
 0x29d   : > { %v1975_v41 = vpop.f32.mrf.mxu1 }
 0x29e   : > { %v2664_v19 = vadd.f32 %v2592_v58, %v2354_v49  ;;  %v2905_v48 = vpop.f32.mrf.mxu0  ;;  %v2045_v18 = vadd.f32 %v1975_v41, %v4288_v7  ;;  %p3588_p7 = pnand %p3587_p6, %p3583_p2 }
 0x2a0   : > { %v2974_v59 = vadd.f32 %v2902_v6, %v2664_v19  ;;  %3363 = vmatmul.msk.f32.gmra.mxu1 %vm238_vm1, %v2095_v54  ;;  %3401 = vmatmul.msk.f32.gmra.mxu2 %vm238_vm1, %v2097_v12 }
 0x2a1   : > { %3439 = vmatmul.msk.f32.gmra.mxu3 %vm238_vm1, %v2407_v55  ;;  %3477 = vmatmul.msk.f32.gmra.mxu0 %vm238_vm1, %v2717_v30 }
 0x2a2   : > { %3010 = vst [vmem:[%s4480_s10 + $0x90] sm:$0xff] %v2974_v59 }
 0x2a3   : > { %v2285_v28 = vpop.f32.mrf.mxu2 }
 0x2a4   : > { %v2355_v24 = vadd.f32 %v2285_v28, %v2045_v18  ;;  %v2595_v56 = vpop.f32.mrf.mxu3 }
 0x2a5   : > { %v1978_v25 = vpop.f32.mrf.mxu1 }
 0x2a6   : > { %v2665_v1 = vadd.f32 %v2595_v56, %v2355_v24  ;;  %v2908_v45 = vpop.f32.mrf.mxu0  ;;  %v2046_v36 = vadd.f32 %v1978_v25, %v4300_v9 }
 0x2a8   : > { %v2975_v27 = vadd.f32 %v2905_v48, %v2665_v1 }
 0x2aa   : > { %3011 = vst [vmem:[%s4480_s10 + $0x98] sm:$0xff] %v2975_v27 }
 0x2ab   : > { %v2288_v0 = vpop.f32.mrf.mxu2 }
 0x2ac   : > { %v2356_v3 = vadd.f32 %v2288_v0, %v2046_v36  ;;  %v2598_v20 = vpop.f32.mrf.mxu3 }
 0x2ad   : > { %v1981_v51 = vpop.f32.mrf.mxu1 }
 0x2ae   : > { %v2666_v35 = vadd.f32 %v2598_v20, %v2356_v3  ;;  %v2911_v63 = vpop.f32.mrf.mxu0  ;;  %v2047_v43 = vadd.f32 %v1981_v51, %v4311_v50 }
 0x2b0   : > { %v2976_v7 = vadd.f32 %v2908_v45, %v2666_v35 }
 0x2b2   : > { %3012 = vst [vmem:[%s4480_s10 + $0xa0] sm:$0xff] %v2976_v7 }
 0x2b3   : > { %v2291_v13 = vpop.f32.mrf.mxu2 }
 0x2b4   : > { %v2357_v2 = vadd.f32 %v2291_v13, %v2047_v43  ;;  %v2601_v10 = vpop.f32.mrf.mxu3 }
 0x2b5   : > { %v1984_v54 = vpop.f32.mrf.mxu1 }
 0x2b6   : > { %v2667_v31 = vadd.f32 %v2601_v10, %v2357_v2  ;;  %v2914_v14 = vpop.f32.mrf.mxu0  ;;  %v2048_v44 = vadd.f32 %v1984_v54, %v4322_v23 }
 0x2b8   : > { %v2977_v9 = vadd.f32 %v2911_v63, %v2667_v31 }
 0x2ba   : > { %3013 = vst [vmem:[%s4480_s10 + $0xa8] sm:$0xff] %v2977_v9 }
 0x2bb   : > { %v2294_v22 = vpop.f32.mrf.mxu2 }
 0x2bc   : > { %v2358_v57 = vadd.f32 %v2294_v22, %v2048_v44  ;;  %v2604_v4 = vpop.f32.mrf.mxu3 }
 0x2bd   : > { %v1987_v42 = vpop.f32.mrf.mxu1 }
 0x2be   : > { %v2668_v47 = vadd.f32 %v2604_v4, %v2358_v57  ;;  %v2917_v29 = vpop.f32.mrf.mxu0  ;;  %v2049_v52 = vadd.f32 %v1987_v42, %v4333_v40 }
 0x2c0   : > { %v2978_v50 = vadd.f32 %v2914_v14, %v2668_v47 }
 0x2c2   : > { %3014 = vst [vmem:[%s4480_s10 + $0xb0] sm:$0xff] %v2978_v50 }
 0x2c3   : > { %v2297_v16 = vpop.f32.mrf.mxu2 }
 0x2c4   : > { %v2359_v5 = vadd.f32 %v2297_v16, %v2049_v52  ;;  %v2607_v38 = vpop.f32.mrf.mxu3 }
 0x2c5   : > { %v1990_v6 = vpop.f32.mrf.mxu1 }
 0x2c6   : > { %v2669_v21 = vadd.f32 %v2607_v38, %v2359_v5  ;;  %v2920_v61 = vpop.f32.mrf.mxu0  ;;  %v2050_v11 = vadd.f32 %v1990_v6, %v4344_v62 }
 0x2c8   : > { %v2979_v23 = vadd.f32 %v2917_v29, %v2669_v21 }
 0x2ca   : > { %3015 = vst [vmem:[%s4480_s10 + $0xb8] sm:$0xff] %v2979_v23 }
 0x2cb   : > { %v2300_v17 = vpop.f32.mrf.mxu2 }
 0x2cc   : > { %v2360_v49 = vadd.f32 %v2300_v17, %v2050_v11  ;;  %v2610_v58 = vpop.f32.mrf.mxu3 }
 0x2cd   : > { %v1993_v41 = vpop.f32.mrf.mxu1 }
 0x2ce   : > { %v2670_v12 = vadd.f32 %v2610_v58, %v2360_v49  ;;  %v2923_v19 = vpop.f32.mrf.mxu0  ;;  %v2051_v55 = vadd.f32 %v1993_v41, %v4355_v8 }
 0x2d0   : > { %v2980_v40 = vadd.f32 %v2920_v61, %v2670_v12 }
 0x2d2   : > { %3016 = vst [vmem:[%s4480_s10 + $0xc0] sm:$0xff] %v2980_v40 }
 0x2d3   : > { %v2303_v48 = vpop.f32.mrf.mxu2 }
 0x2d4   : > { %v2361_v30 = vadd.f32 %v2303_v48, %v2051_v55  ;;  %v2613_v59 = vpop.f32.mrf.mxu3 }
 0x2d5   : > { %v1996_v18 = vpop.f32.mrf.mxu1 }
 0x2d6   : > { %v2671_v28 = vadd.f32 %v2613_v59, %v2361_v30  ;;  %v2926_v24 = vpop.f32.mrf.mxu0  ;;  %v2052_v56 = vadd.f32 %v1996_v18, %v4366_v34 }
 0x2d8   : > { %v2981_v62 = vadd.f32 %v2923_v19, %v2671_v28 }
 0x2da   : > { %3017 = vst [vmem:[%s4480_s10 + $0xc8] sm:$0xff] %v2981_v62 }
 0x2db   : > { %v2306_v25 = vpop.f32.mrf.mxu2 }
 0x2dc   : > { %v2362_v1 = vadd.f32 %v2306_v25, %v2052_v56  ;;  %v2616_v45 = vpop.f32.mrf.mxu3 }
 0x2dd   : > { %v1999_v27 = vpop.f32.mrf.mxu1 }
 0x2de   : > { %v2672_v36 = vadd.f32 %v2616_v45, %v2362_v1  ;;  %v2929_v0 = vpop.f32.mrf.mxu0  ;;  %v2053_v3 = vadd.f32 %v1999_v27, %v4377_v32 }
 0x2e0   : > { %v2982_v8 = vadd.f32 %v2926_v24, %v2672_v36 }
 0x2e2   : > { %3018 = vst [vmem:[%s4480_s10 + $0xd0] sm:$0xff] %v2982_v8 }
 0x2e3   : > { %v2309_v20 = vpop.f32.mrf.mxu2 }
 0x2e4   : > { %v2363_v51 = vadd.f32 %v2309_v20, %v2053_v3  ;;  %v2619_v35 = vpop.f32.mrf.mxu3 }
 0x2e5   : > { %v2002_v63 = vpop.f32.mrf.mxu1 }
 0x2e6   : > { %v2673_v7 = vadd.f32 %v2619_v35, %v2363_v51  ;;  %v2932_v43 = vpop.f32.mrf.mxu0  ;;  %v2054_v13 = vadd.f32 %v2002_v63, %v4388_v39 }
 0x2e8   : > { %v2983_v34 = vadd.f32 %v2929_v0, %v2673_v7 }
 0x2ea   : > { %3019 = vst [vmem:[%s4480_s10 + $0xd8] sm:$0xff] %v2983_v34 }
 0x2eb   : > { %v2312_v2 = vpop.f32.mrf.mxu2 }
 0x2ec   : > { %v2364_v10 = vadd.f32 %v2312_v2, %v2054_v13  ;;  %v2622_v54 = vpop.f32.mrf.mxu3 }
 0x2ed   : > { %v2005_v31 = vpop.f32.mrf.mxu1 }
 0x2ee   : > { %v2674_v14 = vadd.f32 %v2622_v54, %v2364_v10  ;;  %v2935_v9 = vpop.f32.mrf.mxu0  ;;  %v2055_v44 = vadd.f32 %v2005_v31, %v4399_v46 }
 0x2f0   : > { %v2984_v32 = vadd.f32 %v2932_v43, %v2674_v14 }
 0x2f2   : > { %3020 = vst [vmem:[%s4480_s10 + $0xe0] sm:$0xff] %v2984_v32 }
 0x2f3   : > { %v2315_v22 = vpop.f32.mrf.mxu2 }
 0x2f4   : > { %v2365_v57 = vadd.f32 %v2315_v22, %v2055_v44  ;;  %v2625_v4 = vpop.f32.mrf.mxu3 }
 0x2f5   : > { %v2008_v42 = vpop.f32.mrf.mxu1 }
 0x2f6   : > { %v2675_v47 = vadd.f32 %v2625_v4, %v2365_v57  ;;  %v2938_v29 = vpop.f32.mrf.mxu0  ;;  %v2056_v50 = vadd.f32 %v2008_v42, %v4410_v53 }
 0x2f8   : > { %v2985_v39 = vadd.f32 %v2935_v9, %v2675_v47 }
 0x2fa   : > { %3021 = vst [vmem:[%s4480_s10 + $0xe8] sm:$0xff] %v2985_v39 }
 0x2fb   : > { %v2318_v52 = vpop.f32.mrf.mxu2 }
 0x2fc   : > { %v2366_v16 = vadd.f32 %v2318_v52, %v2056_v50  ;;  %v2628_v5 = vpop.f32.mrf.mxu3 }
 0x2fd   : > { %v2011_v38 = vpop.f32.mrf.mxu1 }
 0x2fe   : > { %v2676_v6 = vadd.f32 %v2628_v5, %v2366_v16  ;;  %v2941_v21 = vpop.f32.mrf.mxu0  ;;  %v2057_v61 = vadd.f32 %v2011_v38, %v4423_v60 }
 0x300   : > { %v2986_v46 = vadd.f32 %v2938_v29, %v2676_v6 }
 0x302   : > { %3022 = vst [vmem:[%s4480_s10 + $0xf0] sm:$0xff] %v2986_v46 }
 0x303   : > { %v2321_v23 = vpop.f32.mrf.mxu2 }
 0x304   : > { %v2367_v11 = vadd.f32 %v2321_v23, %v2057_v61  ;;  %v2631_v17 = vpop.f32.mrf.mxu3 }
 0x305   : > { %v2014_v49 = vpop.f32.mrf.mxu1 }
 0x306   : > { %v2677_v58 = vadd.f32 %v2631_v17, %v2367_v11  ;;  %v2944_v41 = vpop.f32.mrf.mxu0  ;;  %v2058_v12 = vadd.f32 %v2014_v49, %v4433_v26 }
 0x308   : > { %v2987_v53 = vadd.f32 %v2941_v21, %v2677_v58 }
 0x30a   : > { %3023 = vst [vmem:[%s4480_s10 + $0xf8] sm:$0xff] %v2987_v53 }
 0x30b   : > { %v2324_v19 = vpop.f32.mrf.mxu2 }
 0x30c   : > { %v2368_v40 = vadd.f32 %v2324_v19, %v2058_v12  ;;  %v2634_v55 = vpop.f32.mrf.mxu3 }
 0x30d   : > { %v2017_v48 = vpop.f32.mrf.mxu1 }
 0x30e   : > { %v2678_v60 = vadd.f32 %v2634_v55, %v2368_v40  ;;  %v2947_v59 = vpop.f32.mrf.mxu0  ;;  %v2059_v18 = vadd.f32 %v2017_v48, %v4443_v33 }
 0x310   : > { %v2988_v30 = vadd.f32 %v2944_v41, %v2678_v60 }
 0x312   : > { %3024 = vst [vmem:[%s4480_s10 + $0x100] sm:$0xff] %v2988_v30 }
 0x313   : > { %v2327_v28 = vpop.f32.mrf.mxu2 }
 0x314   : > { %v2369_v24 = vadd.f32 %v2327_v28, %v2059_v18  ;;  %v2637_v62 = vpop.f32.mrf.mxu3 }
 0x315   : > { %v2020_v56 = vpop.f32.mrf.mxu1 }
 0x316   : > { %v2679_v25 = vadd.f32 %v2637_v62, %v2369_v24  ;;  %v2060_v1 = vadd.f32 %v2020_v56, %v4453_v15  ;;  %v2950_v27 = vpop.f32.mrf.mxu0 }
 0x318   : > { %v2989_v26 = vadd.f32 %v2947_v59, %v2679_v25 }
 0x31a   : > { %3025 = vst [vmem:[%s4480_s10 + $0x108] sm:$0xff] %v2989_v26 }
 0x31b   : > { %v2330_v45 = vpop.f32.mrf.mxu2 }
 0x31c   : > { %v2370_v36 = vadd.f32 %v2330_v45, %v2060_v1  ;;  %v2640_v0 = vpop.f32.mrf.mxu3 }
 0x31d   : > { %v2023_v8 = vpop.f32.mrf.mxu1 }
 0x31e   : > { %v2680_v33 = vadd.f32 %v2640_v0, %v2370_v36  ;;  %v2061_v20 = vadd.f32 %v2023_v8, %v4462_v37  ;;  %v2953_v63 = vpop.f32.mrf.mxu0 }
 0x320   : > { %v2990_v3 = vadd.f32 %v2950_v27, %v2680_v33 }
 0x322   : > { %3026 = vst [vmem:[%s4480_s10 + $0x110] sm:$0xff] %v2990_v3 }
 0x323   : > { %v2333_v15 = vpop.f32.mrf.mxu2 }
 0x324   : > { %v2371_v51 = vadd.f32 %v2333_v15, %v2061_v20  ;;  %v2643_v35 = vpop.f32.mrf.mxu3 }
 0x326   : > { %v2681_v7 = vadd.f32 %v2643_v35, %v2371_v51 }
 0x328   : > { %v2991_v43 = vadd.f32 %v2953_v63, %v2681_v7 }
 0x32a   : > { %3027 = vst [vmem:[%s4480_s10 + $0x118] sm:$0xff] %v2991_v43 }
 0x32b   : > { %3591 = shalt.err (!%p3588_p7)
}
 0x32c   : > { %s3660_s7 = smov 128   ;;  %s3661_s10 = smov 8  }
 0x32d   : > { %3489 = dma.vmem_to_hbm [thread:$0]  (%p3733_p3), %s3044_s27, 4608, %s3046_s28, %s3029_s29, %s3660_s7, %s3660_s7, %s3661_s10  }
 0x32e PF: > { %p3495_p9 = scmp.ge.s32.totalorder %s3658_s19, 2  ;;  %s3060_s21 = sand.u32 1, %s3630_s12  }
 0x32f   : > { %s3061_s15 = scalar_lea.sflag [#allocation3], %s3060_s21 }
 0x330   : > { %p3492_p10 = pnand %p3495_p9, %p3742_p8 }
 0x332   : > { %p3493_p11 = pneg %p3492_p10 }
 0x334   : > { %3625 = dma.done.wait (%p3493_p11), %s3061_s15, 4608  }
 0x335   : > { %3627 = vsyncadd (%p3493_p11), %s3061_s15, 4294962688  ;;  %s16_s19 = sadd.s32 1, %s3658_s19   ;;  %s4730_s12 = smov %s3634_s13 }
 0x336   : > { %p13_p12 = scmp.ge.s32.totalorder %s16_s19, 18   ;;  %s4731_s13 = smov %s3638_s14 }
 0x337   : > { %s4732_s14 = smov %s3751_s30  ;;  %s4733_s15 = smov %s3650_s17 }
 0x338   : > { %s4734_s16 = smov %s3654_s18  ;;  %s4735_s17 = smov %s4738_s22 }
 0x339   : > { %s4736_s18 = smov %s4742_s23  ;;  %15 = sbr.rel (!%p13_p12) target bundleno = 5 (0x5), region = 75 }
 0x33e   :  { %3067 = vsyncpa [#allocation3], 1 }
 0x33f   :  { %3069 = vsyncpa [#allocation3 + $0x1], 1 }

</bundles_post_ra>
